<compile_context>
chip_gen: v7x
topology: tpu7x:2x2x1
jax: 0.10.0
libtpu: 0.0.40
codegen_flags: <defaults>
</compile_context>

<pallas_src>
import functools

import jax
import jax.numpy as jnp
from jax.experimental import pallas as pl
from jax.experimental.pallas import tpu as pltpu

LANE = 128   # output channels padded to a lane multiple (dense stores / full MXU columns)
SUB = 8      # sublane multiple (input channels, padded widths)


def _ru(x, m):
    return (x + m - 1) // m * m


def _pick_th(oh, n, target=8):
    """Largest divisor of OH <= target; keep >=2 grid slices for v7x's two TCs."""
    divs = [d for d in range(1, oh + 1) if oh % d == 0 and d <= target]
    th = max(divs)
    if n * (oh // th) < 2:
        smaller = [d for d in divs if oh // d >= 2]
        if smaller:
            th = max(smaller)
    return th


# ---------------------------------------------------------------------------
# Kernel: one (TH, Wc8, OCP) output tile per grid step.
# ---------------------------------------------------------------------------
def _make_kernel(*, th, wc8, ow, kin, ocp, stride, n_col, n_top, n_bottom,
                 mask_halo, fold, relu, res_mode, kres):
    m = th * wc8

    def kernel(*refs):
        i = 0
        top_ref = None
        if n_top:
            top_ref = refs[i]; i += 1
        main_ref = refs[i]; i += 1
        bot_refs = refs[i:i + n_bottom]; i += n_bottom
        w_ref = refs[i]; i += 1
        b_ref = refs[i]; i += 1
        xd_ref = wd_ref = None
        if res_mode == "conv":
            xd_ref, wd_ref = refs[i], refs[i + 1]; i += 2
        elif res_mode == "direct":
            xd_ref = refs[i]; i += 1
        o_ref = refs[i]

        ohi = pl.program_id(1)
        last = pl.num_programs(1) - 1

        # Assemble the row window (outer-dim concat only).
        parts = []
        if n_top:
            v = top_ref[0]
            if mask_halo:                       # row -1 of an unpadded input -> zero
                v = jnp.where(ohi == 0, jnp.zeros_like(v), v)
            parts.append(v)
        parts.append(main_ref[0])
        for b, br in enumerate(bot_refs):
            v = br[0]
            if mask_halo and b == 0:            # row OH of an unpadded input -> zero
                v = jnp.where(ohi == last, jnp.zeros_like(v), v)
            parts.append(v)
        full = jnp.concatenate(parts, axis=0)   # (R, wc8, kin)

        # Row-tap slabs (outer-dim slices / leading-dim reshape only; wc8 % 8 == 0 so the
        # (th, wc8, kin) -> (th*wc8, kin) flatten is layout-trivial).
        if stride == 2:
            fr = full.reshape(th + 1, 2, wc8, kin)
            slabs = [fr[0:th, 0], fr[0:th, 1], fr[1:th + 1, 0]]
        else:
            slabs = [full[di:di + th] for di in range(3)]
        slabs = [s.reshape(m, kin) for s in slabs]

        acc = jnp.zeros((m, ocp), jnp.float32) + b_ref[...]        # bias broadcast

        def shifted(x, dj):
            # output column xo needs input position xo - 1 + dj  ->  shift rows by 1 - dj.
            # (jnp.roll == static slice+concat; pltpu.roll(x, 1-dj, 0) is the XLU-rotate
            #  equivalent.)  Wrap rows only land in border columns, zeroed below.
            return x if dj == 1 else jnp.roll(x, 1 - dj, axis=0)

        if fold:
            # Fold the 3 row taps into the contraction: n_col dots of depth 3*kin.
            lhs_all = jnp.concatenate(slabs, axis=1)               # (m, 3*kin)
            for dj in range(n_col):
                acc = acc + jnp.dot(shifted(lhs_all, dj), w_ref[dj],
                                    preferred_element_type=jnp.float32)
        else:
            for di in range(3):
                for dj in range(n_col):
                    acc = acc + jnp.dot(shifted(slabs[di], dj), w_ref[di, dj],
                                        preferred_element_type=jnp.float32)

        if res_mode == "conv":      # fused 1x1 downsample conv (BN bias already in b_ref)
            acc = acc + jnp.dot(xd_ref[0].reshape(m, kres), wd_ref[...],
                                preferred_element_type=jnp.float32)
        elif res_mode == "direct":  # identity residual
            acc = acc + xd_ref[0].reshape(m, ocp).astype(jnp.float32)

        if relu:
            acc = jnp.maximum(acc, 0.0)

        # Zero the W borders: only columns 1..ow are real, so this tile doubles as the
        # next conv's W padding and kills any roll wrap garbage.
        col = jax.lax.broadcasted_iota(jnp.int32, (m, 1), 0) % wc8
        acc = jnp.where((col >= 1) & (col <= ow), acc, 0.0)

        o_ref[0] = acc.reshape(th, wc8, ocp).astype(o_ref.dtype)

    return kernel


def _conv_call(x, w_taps, bias, *, stride, th, oh, ow, ocp, n_col, n_top, n_bottom,
               mask_halo, fold, relu, out_dtype, res_mode=None, xd=None, wd=None):
    n, hin, wc8, kin = x.shape
    nb = oh // th
    grid = (n, nb)

    in_specs, args = [], []
    if n_top:
        in_specs.append(pl.BlockSpec(
            (1, 1, wc8, kin),
            lambda ni, ohi: (ni, jnp.maximum(ohi * th - 1, 0), 0, 0)))
        args.append(x)
    in_specs.append(pl.BlockSpec((1, stride * th, wc8, kin),
                                 lambda ni, ohi: (ni, ohi, 0, 0)))
    args.append(x)
    for b in range(n_bottom):
        in_specs.append(pl.BlockSpec(
            (1, 1, wc8, kin),
            lambda ni, ohi, b=b: (ni, jnp.minimum(stride * th * (ohi + 1) + b, hin - 1),
                                  0, 0)))
        args.append(x)
    in_specs.append(pl.BlockSpec(w_taps.shape, lambda ni, ohi: (0,) * w_taps.ndim))
    args.append(w_taps)
    in_specs.append(pl.BlockSpec(bias.shape, lambda ni, ohi: (0, 0)))
    args.append(bias)

    kres = 0
    if res_mode is not None:
        kres = xd.shape[-1]
        in_specs.append(pl.BlockSpec((1, th, wc8, kres),
                                     lambda ni, ohi: (ni, ohi, 0, 0)))
        args.append(xd)
        if res_mode == "conv":
            in_specs.append(pl.BlockSpec(wd.shape, lambda ni, ohi: (0, 0)))
            args.append(wd)

    kernel = _make_kernel(th=th, wc8=wc8, ow=ow, kin=kin, ocp=ocp, stride=stride,
                          n_col=n_col, n_top=n_top, n_bottom=n_bottom,
                          mask_halo=mask_halo, fold=fold, relu=relu,
                          res_mode=res_mode, kres=kres)

    out_bytes = n * oh * wc8 * ocp * jnp.dtype(out_dtype).itemsize
    flops = 2 * n * oh * wc8 * ocp * (3 * n_col * kin + kres)
    bytes_acc = (x.size * x.dtype.itemsize
                 + w_taps.size * w_taps.dtype.itemsize + bias.size * bias.dtype.itemsize
                 + (xd.size * xd.dtype.itemsize if xd is not None else 0)
                 + (wd.size * wd.dtype.itemsize if wd is not None else 0)
                 + out_bytes)

    # Per-step VMEM footprint; only raise the scoped limit when actually needed
    # (keeps headroom on v7x's 64 MiB).
    itm = x.dtype.itemsize
    blk = ((n_top + n_bottom + stride * th) * wc8 * kin * itm
           + th * wc8 * ocp * jnp.dtype(out_dtype).itemsize
           + (th * wc8 * kres * itm if xd is not None else 0))
    wbytes = (w_taps.size * w_taps.dtype.itemsize + bias.size * bias.dtype.itemsize
              + (wd.size * wd.dtype.itemsize if wd is not None else 0))
    vmem_est = 2 * blk + 2 * wbytes + 6 * th * wc8 * ocp * 4
    cparams = dict(dimension_semantics=("parallel", "parallel"))
    if vmem_est > 28 * 1024 * 1024:
        cparams["vmem_limit_bytes"] = int(min(1.5 * vmem_est, 100 * 1024 * 1024))

    return pl.pallas_call(
        kernel,
        grid=grid,
        in_specs=in_specs,
        out_specs=pl.BlockSpec((1, th, wc8, ocp), lambda ni, ohi: (ni, ohi, 0, 0)),
        out_shape=jax.ShapeDtypeStruct((n, oh, wc8, ocp), out_dtype),
        compiler_params=pltpu.CompilerParams(**cparams),
        cost_estimate=pl.CostEstimate(flops=int(flops), transcendentals=0,
                                      bytes_accessed=int(bytes_acc)),
    )(*args)


# ---------------------------------------------------------------------------
# Wrapper-side prep: BN folding, padding / column phasing, tap-weight assembly.
# ---------------------------------------------------------------------------
def _fold_bn(w, bn):
    gamma, beta, mean, var, eps = bn
    s = gamma / jnp.sqrt(var + eps)
    return w * s[:, None, None, None], beta - mean * s


def _prep_input(x_nhwc, stride, wc8, c_pad, compute_dtype):
    """One fused pad (+phase reshape for stride 2): H halo, W halo + width to wc8, channels."""
    n, h, w, c = x_nhwc.shape
    if stride == 2:
        xp = jnp.pad(x_nhwc, ((0, 0), (1, 1), (1, 2 * wc8 - w - 1), (0, c_pad - c)))
        xp = xp.reshape(n, h + 2, wc8, 2 * c_pad)      # fold column parity into channels
    else:
        xp = jnp.pad(x_nhwc, ((0, 0), (1, 1), (1, wc8 - w - 1), (0, c_pad - c)))
    return xp.astype(compute_dtype)


def _prep_weights(w, bn, cin_pad, stride, fold, compute_dtype):
    """BN scale folded in; -> (w_taps, bias(f32), n_col)."""
    oc, cin = w.shape[0], w.shape[1]
    ocp = _ru(oc, LANE)
    w_s, b = _fold_bn(w, bn)
    w_p = jnp.zeros((ocp, cin_pad, 3, 3), jnp.float32).at[:oc, :cin].set(w_s)
    bias = jnp.zeros((1, ocp), jnp.float32).at[0, :oc].set(b)

    def tap(di, dj):
        return w_p[:, :, di, dj].T                      # (cin_pad, ocp)

    if stride == 1:
        taps = [[tap(di, dj) for dj in range(3)] for di in range(3)]
        n_col = 3
    else:   # column-phased input: channels are [even | odd] x cin_pad
        zero = jnp.zeros((cin_pad, ocp), jnp.float32)
        taps = [[jnp.concatenate([tap(di, 0), tap(di, 1)], axis=0),
                 jnp.concatenate([tap(di, 2), zero], axis=0)] for di in range(3)]
        n_col = 2
    if fold:   # (n_col, 3*kin, ocp): 3 row taps folded into K
        w_taps = jnp.stack([jnp.concatenate([taps[di][dj] for di in range(3)], axis=0)
                            for dj in range(n_col)])
    else:      # (3, n_col, kin, ocp)
        w_taps = jnp.stack([jnp.stack(taps[di]) for di in range(3)])
    return w_taps.astype(compute_dtype), bias, n_col


# ---------------------------------------------------------------------------
# BasicBlock forward
# ---------------------------------------------------------------------------
@functools.partial(jax.jit, static_argnames=("stride", "downsample", "res",
                                              "compute_dtype", "out_dtype", "th_target"))
def basic_block_forward(x_nchw, params, stride=2, downsample=1, res=0,
                        compute_dtype=jnp.bfloat16, out_dtype=jnp.float32, th_target=8):
    assert stride in (1, 2)
    n, cin, h, w = x_nchw.shape
    oc = params["w1"].shape[0]
    if stride == 2:
        assert h % 2 == 0 and w % 2 == 0, "stride-2 path assumes even H/W"
    oh, ow = h // stride, w // stride
    ocp = _ru(oc, LANE)
    cinp = _ru(cin, SUB)
    wc8 = _ru(ow + 2, SUB)                 # common padded width for all tiles
    th = _pick_th(oh, n, th_target)

    x = jnp.transpose(x_nchw, (0, 2, 3, 1))    # NCHW -> NHWC (once per block)

    # ---- conv1: 3x3 / stride + BN + ReLU ----
    kin1 = cinp * (2 if stride == 2 else 1)
    fold1 = (kin1 % LANE == 0) and (kin1 <= 2 * LANE)
    xp1 = _prep_input(x, stride, wc8, cinp, compute_dtype)
    w1t, b1, n_col1 = _prep_weights(params["w1"], params["bn1"], cinp, stride, fold1,
                                    compute_dtype)
    y1 = _conv_call(xp1, w1t, b1, stride=stride, th=th, oh=oh, ow=ow, ocp=ocp,
                    n_col=n_col1, n_top=0, n_bottom=2, mask_halo=False, fold=fold1,
                    relu=True, out_dtype=compute_dtype)
    # y1: (N, OH, wc8, OCP), W borders already zero -> used directly as conv2's W-padded
    # input (no intermediate re-pad HBM pass).

    # ---- conv2: 3x3 / 1 + BN (+ fused residual) + ReLU ----
    kin2 = ocp
    fold2 = (kin2 % LANE == 0) and (kin2 <= 2 * LANE)
    w2t, b2, n_col2 = _prep_weights(params["w2"], params["bn2"], ocp, 1, fold2,
                                    compute_dtype)

    res_mode, xd, wdm = None, None, None
    if res == 1:
        if downsample == 1:
            wd_s, bd = _fold_bn(params["wd"], params["bnd"])
            wdm = (jnp.zeros((cinp, ocp), jnp.float32)
                   .at[:cin, :oc].set(wd_s[:, :, 0, 0].T).astype(compute_dtype))
            b2 = b2 + jnp.zeros((1, ocp), jnp.float32).at[0, :oc].set(bd)
            xs = x[:, ::stride, ::stride, :]                  # minimal 1x1-conv input
            xd = jnp.pad(xs, ((0, 0), (0, 0), (1, wc8 - ow - 1), (0, cinp - cin))
                         ).astype(compute_dtype)
            res_mode = "conv"
        else:
            assert stride == 1 and cin == oc, \
                "identity residual requires stride=1 and matching channel counts"
            xd = jnp.pad(x, ((0, 0), (0, 0), (1, wc8 - ow - 1), (0, ocp - cin))
                         ).astype(compute_dtype)
            res_mode = "direct"

    y2 = _conv_call(y1, w2t, b2, stride=1, th=th, oh=oh, ow=ow, ocp=ocp,
                    n_col=n_col2, n_top=1, n_bottom=1, mask_halo=True, fold=fold2,
                    relu=True, out_dtype=out_dtype, res_mode=res_mode, xd=xd, wd=wdm)

    # Drop W/channel padding and return NCHW (one fused XLA copy).
    return jnp.transpose(y2[:, :, 1:ow + 1, :oc], (0, 3, 1, 2))


# ---------------------------------------------------------------------------
# Pure-JAX reference (lax.conv, HIGHEST precision) for verification
# ---------------------------------------------------------------------------
def _ref_conv_bn(x, w, bn, stride, pad):
    y = jax.lax.conv_general_dilated(
        x, w, (stride, stride), ((pad, pad), (pad, pad)),
        dimension_numbers=("NCHW", "OIHW", "NCHW"),
        precision=jax.lax.Precision.HIGHEST)
    gamma, beta, mean, var, eps = bn
    s = gamma / jnp.sqrt(var + eps)
    return y * s[None, :, None, None] + (beta - mean * s)[None, :, None, None]


def ref_block(x, params, stride=2, downsample=1, res=0):
    out = jax.nn.relu(_ref_conv_bn(x, params["w1"], params["bn1"], stride, 1))
    out = _ref_conv_bn(out, params["w2"], params["bn2"], 1, 1)
    if res == 1:
        ident = (_ref_conv_bn(x, params["wd"], params["bnd"], stride, 0)
                 if downsample == 1 else x)
        out = out + ident
    return jax.nn.relu(out)


def make_params(key, inplanes, out_planes):
    ks = jax.random.split(key, 6)
    eps = jnp.float32(1e-5)

    def bn(k):
        k1, k2, k3, k4 = jax.random.split(k, 4)
        gamma = 1.0 + 0.1 * jax.random.normal(k1, (out_planes,), jnp.float32)
        beta = 0.1 * jax.random.normal(k2, (out_planes,), jnp.float32)
        mean = 0.05 * jax.random.normal(k3, (out_planes,), jnp.float32)
        var = jnp.abs(1.0 + 0.1 * jax.random.normal(k4, (out_planes,), jnp.float32))
        return (gamma, beta, mean, var, eps)

    return {
        "w1": 0.1 * jax.random.normal(ks[0], (out_planes, inplanes, 3, 3), jnp.float32),
        "bn1": bn(ks[1]),
        "w2": 0.1 * jax.random.normal(ks[2], (out_planes, out_planes, 3, 3), jnp.float32),
        "bn2": bn(ks[3]),
        "wd": 0.1 * jax.random.normal(ks[4], (out_planes, inplanes, 1, 1), jnp.float32),
        "bnd": bn(ks[5]),
    }


if __name__ == "__main__":
    key = jax.random.PRNGKey(0)
    kx, kp, kx2, kp2, kx3, kp3 = jax.random.split(key, 6)

    # --- Test 1: module defaults (stride=2, downsample=1), small shapes, res=0/1 ---
    N, C_in, C_out, H, W = 2, 4, 8, 16, 16
    x = jax.random.normal(kx, (N, C_in, H, W), jnp.float32)
    params = make_params(kp, C_in, C_out)
    for r in (0, 1):
        ref = ref_block(x, params, stride=2, downsample=1, res=r)
        out = jax.block_until_ready(basic_block_forward(
            x, params, stride=2, downsample=1, res=r, compute_dtype=jnp.float32))
        assert out.shape == (N, C_out, H // 2, W // 2)
        assert jnp.allclose(out, ref, atol=1e-2, rtol=1e-2), f"f32 mismatch (res={r})"
        outb = jax.block_until_ready(basic_block_forward(
            x, params, stride=2, downsample=1, res=r, compute_dtype=jnp.bfloat16))
        assert jnp.allclose(outb, ref, atol=5e-2, rtol=5e-2), f"bf16 mismatch (res={r})"

    # --- Test 2: lane-aligned channels -> exercises the folded-row-tap (deep-K) path ---
    x2 = jax.random.normal(kx2, (1, 64, 16, 16), jnp.float32)
    params2 = make_params(kp2, 64, 128)
    ref2 = ref_block(x2, params2, stride=2, downsample=1, res=1)
    out2 = jax.block_until_ready(basic_block_forward(
        x2, params2, stride=2, downsample=1, res=1, compute_dtype=jnp.float32))
    assert jnp.allclose(out2, ref2, atol=5e-2, rtol=5e-2), "mismatch (folded-K path)"

    # --- Test 3: stride=1, identity residual, multi-row-block grid (halo masking) ---
    x3 = jax.random.normal(kx3, (2, 8, 16, 16), jnp.float32)
    params3 = make_params(kp3, 8, 8)
    ref3 = ref_block(x3, params3, stride=1, downsample=0, res=1)
    out3 = jax.block_until_ready(basic_block_forward(
        x3, params3, stride=1, downsample=0, res=1, compute_dtype=jnp.float32))
    assert jnp.allclose(out3, ref3, atol=1e-2, rtol=1e-2), "mismatch (stride-1/identity)"

    print("KERNEL_OK")
</pallas_src>

<mosaic_0001>
module attributes {stable_mosaic.version = 11 : i64} {
  func.func @kernel(%arg0: i32, %arg1: i32, %arg2: memref<1x1x16x128xf32, #tpu.memory_space<vmem>>, %arg3: memref<1x8x16x128xf32, #tpu.memory_space<vmem>>, %arg4: memref<1x1x16x128xf32, #tpu.memory_space<vmem>>, %arg5: memref<3x384x128xf32, #tpu.memory_space<vmem>>, %arg6: memref<1x128xf32, #tpu.memory_space<vmem>>, %arg7: memref<1x8x16x128xf32, #tpu.memory_space<vmem>>) attributes {dimension_semantics = [#tpu.dimension_semantics<parallel>, #tpu.dimension_semantics<parallel>], iteration_bounds = array<i64: 2, 1>, scalar_prefetch = 0 : i64, scratch_operands = 0 : i64, tpu.core_type = #tpu.core_type<tc>, window_params = [{transform_indices = @transform_0, window_bounds = array<i64: 1, 1, 16, 128>}, {transform_indices = @transform_1, window_bounds = array<i64: 1, 8, 16, 128>}, {transform_indices = @transform_2, window_bounds = array<i64: 1, 1, 16, 128>}, {pipeline_mode = #tpu.pipeline_mode<synchronous>, transform_indices = @transform_3, window_bounds = array<i64: 3, 384, 128>}, {pipeline_mode = #tpu.pipeline_mode<synchronous>, transform_indices = @transform_4, window_bounds = array<i64: 1, 128>}, {transform_indices = @transform_5, window_bounds = array<i64: 1, 8, 16, 128>}]} {
    %c0 = arith.constant 0 : index
    %c0_0 = arith.constant 0 : index
    %c0_1 = arith.constant 0 : index
    %c0_2 = arith.constant 0 : index
    %0 = vector.load %arg2[%c0, %c0_0, %c0_1, %c0_2] : memref<1x1x16x128xf32, #tpu.memory_space<vmem>>, vector<1x1x16x128xf32>
    %1 = vector.shape_cast %0 : vector<1x1x16x128xf32> to vector<1x16x128xf32>
    %c0_i32 = arith.constant 0 : i32
    %2 = arith.cmpi eq, %arg1, %c0_i32 : i32
    %cst = arith.constant 0.000000e+00 : f32
    %3 = vector.broadcast %cst : f32 to vector<1x16x128xf32>
    %4 = arith.select %2, %3, %1 : vector<1x16x128xf32>
    %c0_3 = arith.constant 0 : index
    %c0_4 = arith.constant 0 : index
    %c0_5 = arith.constant 0 : index
    %c0_6 = arith.constant 0 : index
    %5 = vector.load %arg3[%c0_3, %c0_4, %c0_5, %c0_6] : memref<1x8x16x128xf32, #tpu.memory_space<vmem>>, vector<1x8x16x128xf32>
    %6 = vector.shape_cast %5 : vector<1x8x16x128xf32> to vector<8x16x128xf32>
    %c0_7 = arith.constant 0 : index
    %c0_8 = arith.constant 0 : index
    %c0_9 = arith.constant 0 : index
    %c0_10 = arith.constant 0 : index
    %7 = vector.load %arg4[%c0_7, %c0_8, %c0_9, %c0_10] : memref<1x1x16x128xf32, #tpu.memory_space<vmem>>, vector<1x1x16x128xf32>
    %8 = vector.shape_cast %7 : vector<1x1x16x128xf32> to vector<1x16x128xf32>
    %c0_i32_11 = arith.constant 0 : i32
    %9 = arith.cmpi eq, %arg1, %c0_i32_11 : i32
    %cst_12 = arith.constant 0.000000e+00 : f32
    %10 = vector.broadcast %cst_12 : f32 to vector<1x16x128xf32>
    %11 = arith.select %9, %10, %8 : vector<1x16x128xf32>
    %12 = tpu.concatenate %4, %6, %11 in 0 : vector<1x16x128xf32>, vector<8x16x128xf32>, vector<1x16x128xf32> -> vector<10x16x128xf32>
    %13 = vector.extract_strided_slice %12 {offsets = [0, 0, 0], sizes = [8, 16, 128], strides = [1, 1, 1]} : vector<10x16x128xf32> to vector<8x16x128xf32>
    %14 = vector.extract_strided_slice %12 {offsets = [1, 0, 0], sizes = [8, 16, 128], strides = [1, 1, 1]} : vector<10x16x128xf32> to vector<8x16x128xf32>
    %15 = vector.extract_strided_slice %12 {offsets = [2, 0, 0], sizes = [8, 16, 128], strides = [1, 1, 1]} : vector<10x16x128xf32> to vector<8x16x128xf32>
    %16 = vector.shape_cast %13 : vector<8x16x128xf32> to vector<128x128xf32>
    %17 = vector.shape_cast %14 : vector<8x16x128xf32> to vector<128x128xf32>
    %18 = vector.shape_cast %15 : vector<8x16x128xf32> to vector<128x128xf32>
    %cst_13 = arith.constant 0.000000e+00 : f32
    %19 = vector.broadcast %cst_13 : f32 to vector<128x128xf32>
    %c0_14 = arith.constant 0 : index
    %c0_15 = arith.constant 0 : index
    %20 = vector.load %arg6[%c0_14, %c0_15] : memref<1x128xf32, #tpu.memory_space<vmem>>, vector<1x128xf32>
    %21 = vector.broadcast %20 : vector<1x128xf32> to vector<128x128xf32>
    %22 = arith.addf %19, %21 : vector<128x128xf32>
    %23 = tpu.concatenate %16, %17, %18 in 1 : vector<128x128xf32>, vector<128x128xf32>, vector<128x128xf32> -> vector<128x384xf32>
    %24 = vector.extract_strided_slice %23 {offsets = [127, 0], sizes = [1, 384], strides = [1, 1]} : vector<128x384xf32> to vector<1x384xf32>
    %25 = vector.extract_strided_slice %23 {offsets = [0, 0], sizes = [127, 384], strides = [1, 1]} : vector<128x384xf32> to vector<127x384xf32>
    %26 = tpu.concatenate %24, %25 in 0 : vector<1x384xf32>, vector<127x384xf32> -> vector<128x384xf32>
    %c0_16 = arith.constant 0 : index
    %c0_17 = arith.constant 0 : index
    %c0_18 = arith.constant 0 : index
    %27 = vector.load %arg5[%c0_16, %c0_17, %c0_18] : memref<3x384x128xf32, #tpu.memory_space<vmem>>, vector<1x384x128xf32>
    %28 = vector.shape_cast %27 : vector<1x384x128xf32> to vector<384x128xf32>
    %cst_19 = arith.constant dense<0.000000e+00> : vector<128x128xf32>
    %29 = tpu.matmul %26, %28, %cst_19 {dimension_numbers = #tpu.dot_dimension_numbers<[1], [0], [0], [1], [0, 0, 1, 1], [], []>} : vector<128x384xf32>, vector<384x128xf32>, vector<128x128xf32> -> vector<128x128xf32>
    %30 = arith.addf %22, %29 : vector<128x128xf32>
    %c1 = arith.constant 1 : index
    %c0_20 = arith.constant 0 : index
    %c0_21 = arith.constant 0 : index
    %31 = vector.load %arg5[%c1, %c0_20, %c0_21] : memref<3x384x128xf32, #tpu.memory_space<vmem>>, vector<1x384x128xf32>
    %32 = vector.shape_cast %31 : vector<1x384x128xf32> to vector<384x128xf32>
    %cst_22 = arith.constant dense<0.000000e+00> : vector<128x128xf32>
    %33 = tpu.matmul %23, %32, %cst_22 {dimension_numbers = #tpu.dot_dimension_numbers<[1], [0], [0], [1], [0, 0, 1, 1], [], []>} : vector<128x384xf32>, vector<384x128xf32>, vector<128x128xf32> -> vector<128x128xf32>
    %34 = arith.addf %30, %33 : vector<128x128xf32>
    %35 = vector.extract_strided_slice %23 {offsets = [1, 0], sizes = [127, 384], strides = [1, 1]} : vector<128x384xf32> to vector<127x384xf32>
    %36 = vector.extract_strided_slice %23 {offsets = [0, 0], sizes = [1, 384], strides = [1, 1]} : vector<128x384xf32> to vector<1x384xf32>
    %37 = tpu.concatenate %35, %36 in 0 : vector<127x384xf32>, vector<1x384xf32> -> vector<128x384xf32>
    %c2 = arith.constant 2 : index
    %c0_23 = arith.constant 0 : index
    %c0_24 = arith.constant 0 : index
    %38 = vector.load %arg5[%c2, %c0_23, %c0_24] : memref<3x384x128xf32, #tpu.memory_space<vmem>>, vector<1x384x128xf32>
    %39 = vector.shape_cast %38 : vector<1x384x128xf32> to vector<384x128xf32>
    %cst_25 = arith.constant dense<0.000000e+00> : vector<128x128xf32>
    %40 = tpu.matmul %37, %39, %cst_25 {dimension_numbers = #tpu.dot_dimension_numbers<[1], [0], [0], [1], [0, 0, 1, 1], [], []>} : vector<128x384xf32>, vector<384x128xf32>, vector<128x128xf32> -> vector<128x128xf32>
    %41 = arith.addf %34, %40 : vector<128x128xf32>
    %cst_26 = arith.constant 0.000000e+00 : f32
    %42 = vector.broadcast %cst_26 : f32 to vector<128x128xf32>
    %43 = arith.maximumf %41, %42 : vector<128x128xf32>
    %44 = tpu.iota {dimensions = array<i32: 0>} : vector<128x1xi32>
    %c16_i32 = arith.constant 16 : i32
    %c0_i32_27 = arith.constant 0 : i32
    %45 = arith.cmpi eq, %c16_i32, %c0_i32_27 : i32
    %c1_i32 = arith.constant 1 : i32
    %46 = arith.select %45, %c1_i32, %c16_i32 : i32
    %47 = vector.broadcast %46 : i32 to vector<128x1xi32>
    %48 = arith.remsi %44, %47 : vector<128x1xi32>
    %c0_i32_28 = arith.constant 0 : i32
    %49 = vector.broadcast %c0_i32_28 : i32 to vector<128x1xi32>
    %50 = arith.cmpi ne, %48, %49 : vector<128x1xi32>
    %c0_i32_29 = arith.constant 0 : i32
    %51 = vector.broadcast %c0_i32_29 : i32 to vector<128x1xi32>
    %52 = arith.cmpi slt, %48, %51 : vector<128x1xi32>
    %c0_i32_30 = arith.constant 0 : i32
    %53 = arith.cmpi slt, %46, %c0_i32_30 : i32
    %54 = vector.broadcast %53 : i1 to vector<128x1xi1>
    %55 = vector.broadcast %54 : vector<128x1xi1> to vector<128x1xi1>
    %56 = arith.xori %52, %55 : vector<128x1xi1>
    %57 = arith.andi %56, %50 : vector<128x1xi1>
    %58 = vector.broadcast %46 : i32 to vector<128x1xi32>
    %59 = arith.addi %48, %58 : vector<128x1xi32>
    %60 = arith.select %57, %59, %48 : vector<128x1xi1>, vector<128x1xi32>
    %c1_i32_31 = arith.constant 1 : i32
    %61 = vector.broadcast %c1_i32_31 : i32 to vector<128x1xi32>
    %62 = arith.cmpi sge, %60, %61 : vector<128x1xi32>
    %c8_i32 = arith.constant 8 : i32
    %63 = vector.broadcast %c8_i32 : i32 to vector<128x1xi32>
    %64 = arith.cmpi sle, %60, %63 : vector<128x1xi32>
    %65 = arith.andi %62, %64 : vector<128x1xi1>
    %cst_32 = arith.constant 0.000000e+00 : f32
    %66 = vector.shape_cast %65 : vector<128x1xi1> to vector<128x1xi1>
    %67 = vector.broadcast %66 : vector<128x1xi1> to vector<128x128xi1>
    %68 = vector.broadcast %cst_32 : f32 to vector<128x128xf32>
    %69 = arith.select %67, %43, %68 : vector<128x128xi1>, vector<128x128xf32>
    %70 = vector.shape_cast %69 : vector<128x128xf32> to vector<8x16x128xf32>
    %c0_33 = arith.constant 0 : index
    %c0_34 = arith.constant 0 : index
    %c0_35 = arith.constant 0 : index
    %c0_36 = arith.constant 0 : index
    %71 = vector.load %arg7[%c0_33, %c0_34, %c0_35, %c0_36] : memref<1x8x16x128xf32, #tpu.memory_space<vmem>>, vector<1x8x16x128xf32>
    %72 = vector.shape_cast %71 : vector<1x8x16x128xf32> to vector<8x16x128xf32>
    %73 = vector.shape_cast %70 : vector<8x16x128xf32> to vector<1x8x16x128xf32>
    tpu.vector_store %arg7[%c0_33, %c0_34, %c0_35, %c0_36], %73 {strides = array<i32>} : memref<1x8x16x128xf32, #tpu.memory_space<vmem>>, vector<1x8x16x128xf32>,
    return
  }
  func.func @transform_0(%arg0: i32, %arg1: i32) -> (i32, i32, i32, i32) {
    %c8_i32 = arith.constant 8 : i32
    %0 = arith.muli %arg1, %c8_i32 : i32
    %c1_i32 = arith.constant 1 : i32
    %1 = arith.subi %0, %c1_i32 : i32
    %c0_i32 = arith.constant 0 : i32
    %2 = arith.maxsi %1, %c0_i32 : i32
    %c0_i32_0 = arith.constant 0 : i32
    %c0_i32_1 = arith.constant 0 : i32
    %c0_i32_2 = arith.constant 0 : i32
    return %arg0, %2, %c0_i32_0, %c0_i32_1 : i32, i32, i32, i32
  }
  func.func @transform_1(%arg0: i32, %arg1: i32) -> (i32, i32, i32, i32) {
    %c0_i32 = arith.constant 0 : i32
    %c0_i32_0 = arith.constant 0 : i32
    %c0_i32_1 = arith.constant 0 : i32
    return %arg0, %arg1, %c0_i32, %c0_i32_0 : i32, i32, i32, i32
  }
  func.func @transform_2(%arg0: i32, %arg1: i32) -> (i32, i32, i32, i32) {
    %c1_i32 = arith.constant 1 : i32
    %0 = arith.addi %arg1, %c1_i32 : i32
    %c8_i32 = arith.constant 8 : i32
    %1 = arith.muli %c8_i32, %0 : i32
    %c0_i32 = arith.constant 0 : i32
    %2 = arith.addi %1, %c0_i32 : i32
    %c7_i32 = arith.constant 7 : i32
    %3 = arith.minsi %2, %c7_i32 : i32
    %c0_i32_0 = arith.constant 0 : i32
    %c0_i32_1 = arith.constant 0 : i32
    %c0_i32_2 = arith.constant 0 : i32
    return %arg0, %3, %c0_i32_0, %c0_i32_1 : i32, i32, i32, i32
  }
  func.func @transform_3(%arg0: i32, %arg1: i32) -> (i32, i32, i32) {
    %c0_i32 = arith.constant 0 : i32
    %c0_i32_0 = arith.constant 0 : i32
    %c0_i32_1 = arith.constant 0 : i32
    %c0_i32_2 = arith.constant 0 : i32
    return %c0_i32, %c0_i32_0, %c0_i32_1 : i32, i32, i32
  }
  func.func @transform_4(%arg0: i32, %arg1: i32) -> (i32, i32) {
    %c0_i32 = arith.constant 0 : i32
    %c0_i32_0 = arith.constant 0 : i32
    %c0_i32_1 = arith.constant 0 : i32
    return %c0_i32, %c0_i32_0 : i32, i32
  }
  func.func @transform_5(%arg0: i32, %arg1: i32) -> (i32, i32, i32, i32) {
    %c0_i32 = arith.constant 0 : i32
    %c0_i32_0 = arith.constant 0 : i32
    %c0_i32_1 = arith.constant 0 : i32
    return %arg0, %arg1, %c0_i32, %c0_i32_0 : i32, i32, i32, i32
  }
}

module attributes {stable_mosaic.version = 11 : i64} {
  func.func @kernel(%arg0: i32, %arg1: i32, %arg2: memref<1x16x16x16xf32, #tpu.memory_space<vmem>>, %arg3: memref<1x1x16x16xf32, #tpu.memory_space<vmem>>, %arg4: memref<1x1x16x16xf32, #tpu.memory_space<vmem>>, %arg5: memref<3x2x16x128xf32, #tpu.memory_space<vmem>>, %arg6: memref<1x128xf32, #tpu.memory_space<vmem>>, %arg7: memref<1x8x16x128xf32, #tpu.memory_space<vmem>>) attributes {dimension_semantics = [#tpu.dimension_semantics<parallel>, #tpu.dimension_semantics<parallel>], iteration_bounds = array<i64: 2, 1>, scalar_prefetch = 0 : i64, scratch_operands = 0 : i64, tpu.core_type = #tpu.core_type<tc>, window_params = [{transform_indices = @transform_0, window_bounds = array<i64: 1, 16, 16, 16>}, {transform_indices = @transform_1, window_bounds = array<i64: 1, 1, 16, 16>}, {transform_indices = @transform_2, window_bounds = array<i64: 1, 1, 16, 16>}, {pipeline_mode = #tpu.pipeline_mode<synchronous>, transform_indices = @transform_3, window_bounds = array<i64: 3, 2, 16, 128>}, {pipeline_mode = #tpu.pipeline_mode<synchronous>, transform_indices = @transform_4, window_bounds = array<i64: 1, 128>}, {transform_indices = @transform_5, window_bounds = array<i64: 1, 8, 16, 128>}]} {
    %c0 = arith.constant 0 : index
    %c0_0 = arith.constant 0 : index
    %c0_1 = arith.constant 0 : index
    %c0_2 = arith.constant 0 : index
    %0 = vector.load %arg2[%c0, %c0_0, %c0_1, %c0_2] : memref<1x16x16x16xf32, #tpu.memory_space<vmem>>, vector<1x16x16x16xf32>
    %1 = vector.shape_cast %0 : vector<1x16x16x16xf32> to vector<16x16x16xf32>
    %c0_3 = arith.constant 0 : index
    %c0_4 = arith.constant 0 : index
    %c0_5 = arith.constant 0 : index
    %c0_6 = arith.constant 0 : index
    %2 = vector.load %arg3[%c0_3, %c0_4, %c0_5, %c0_6] : memref<1x1x16x16xf32, #tpu.memory_space<vmem>>, vector<1x1x16x16xf32>
    %3 = vector.shape_cast %2 : vector<1x1x16x16xf32> to vector<1x16x16xf32>
    %c0_7 = arith.constant 0 : index
    %c0_8 = arith.constant 0 : index
    %c0_9 = arith.constant 0 : index
    %c0_10 = arith.constant 0 : index
    %4 = vector.load %arg4[%c0_7, %c0_8, %c0_9, %c0_10] : memref<1x1x16x16xf32, #tpu.memory_space<vmem>>, vector<1x1x16x16xf32>
    %5 = vector.shape_cast %4 : vector<1x1x16x16xf32> to vector<1x16x16xf32>
    %6 = tpu.concatenate %1, %3, %5 in 0 : vector<16x16x16xf32>, vector<1x16x16xf32>, vector<1x16x16xf32> -> vector<18x16x16xf32>
    %7 = vector.shape_cast %6 : vector<18x16x16xf32> to vector<9x2x16x16xf32>
    %8 = vector.extract_strided_slice %7 {offsets = [0, 0, 0, 0], sizes = [8, 1, 16, 16], strides = [1, 1, 1, 1]} : vector<9x2x16x16xf32> to vector<8x1x16x16xf32>
    %9 = vector.shape_cast %8 : vector<8x1x16x16xf32> to vector<8x16x16xf32>
    %10 = vector.extract_strided_slice %7 {offsets = [0, 1, 0, 0], sizes = [8, 1, 16, 16], strides = [1, 1, 1, 1]} : vector<9x2x16x16xf32> to vector<8x1x16x16xf32>
    %11 = vector.shape_cast %10 : vector<8x1x16x16xf32> to vector<8x16x16xf32>
    %12 = vector.extract_strided_slice %7 {offsets = [1, 0, 0, 0], sizes = [8, 1, 16, 16], strides = [1, 1, 1, 1]} : vector<9x2x16x16xf32> to vector<8x1x16x16xf32>
    %13 = vector.shape_cast %12 : vector<8x1x16x16xf32> to vector<8x16x16xf32>
    %14 = vector.shape_cast %9 : vector<8x16x16xf32> to vector<128x16xf32>
    %15 = vector.shape_cast %11 : vector<8x16x16xf32> to vector<128x16xf32>
    %16 = vector.shape_cast %13 : vector<8x16x16xf32> to vector<128x16xf32>
    %cst = arith.constant 0.000000e+00 : f32
    %17 = vector.broadcast %cst : f32 to vector<128x128xf32>
    %c0_11 = arith.constant 0 : index
    %c0_12 = arith.constant 0 : index
    %18 = vector.load %arg6[%c0_11, %c0_12] : memref<1x128xf32, #tpu.memory_space<vmem>>, vector<1x128xf32>
    %19 = vector.broadcast %18 : vector<1x128xf32> to vector<128x128xf32>
    %20 = arith.addf %17, %19 : vector<128x128xf32>
    %21 = vector.extract_strided_slice %14 {offsets = [127, 0], sizes = [1, 16], strides = [1, 1]} : vector<128x16xf32> to vector<1x16xf32>
    %22 = vector.extract_strided_slice %14 {offsets = [0, 0], sizes = [127, 16], strides = [1, 1]} : vector<128x16xf32> to vector<127x16xf32>
    %23 = tpu.concatenate %21, %22 in 0 : vector<1x16xf32>, vector<127x16xf32> -> vector<128x16xf32>
    %c0_13 = arith.constant 0 : index
    %c0_14 = arith.constant 0 : index
    %c0_15 = arith.constant 0 : index
    %c0_16 = arith.constant 0 : index
    %24 = vector.load %arg5[%c0_13, %c0_14, %c0_15, %c0_16] : memref<3x2x16x128xf32, #tpu.memory_space<vmem>>, vector<1x1x16x128xf32>
    %25 = vector.shape_cast %24 : vector<1x1x16x128xf32> to vector<16x128xf32>
    %cst_17 = arith.constant dense<0.000000e+00> : vector<128x128xf32>
    %26 = tpu.matmul %23, %25, %cst_17 {dimension_numbers = #tpu.dot_dimension_numbers<[1], [0], [0], [1], [0, 0, 1, 1], [], []>} : vector<128x16xf32>, vector<16x128xf32>, vector<128x128xf32> -> vector<128x128xf32>
    %27 = arith.addf %20, %26 : vector<128x128xf32>
    %c0_18 = arith.constant 0 : index
    %c1 = arith.constant 1 : index
    %c0_19 = arith.constant 0 : index
    %c0_20 = arith.constant 0 : index
    %28 = vector.load %arg5[%c0_18, %c1, %c0_19, %c0_20] : memref<3x2x16x128xf32, #tpu.memory_space<vmem>>, vector<1x1x16x128xf32>
    %29 = vector.shape_cast %28 : vector<1x1x16x128xf32> to vector<16x128xf32>
    %cst_21 = arith.constant dense<0.000000e+00> : vector<128x128xf32>
    %30 = tpu.matmul %14, %29, %cst_21 {dimension_numbers = #tpu.dot_dimension_numbers<[1], [0], [0], [1], [0, 0, 1, 1], [], []>} : vector<128x16xf32>, vector<16x128xf32>, vector<128x128xf32> -> vector<128x128xf32>
    %31 = arith.addf %27, %30 : vector<128x128xf32>
    %32 = vector.extract_strided_slice %15 {offsets = [127, 0], sizes = [1, 16], strides = [1, 1]} : vector<128x16xf32> to vector<1x16xf32>
    %33 = vector.extract_strided_slice %15 {offsets = [0, 0], sizes = [127, 16], strides = [1, 1]} : vector<128x16xf32> to vector<127x16xf32>
    %34 = tpu.concatenate %32, %33 in 0 : vector<1x16xf32>, vector<127x16xf32> -> vector<128x16xf32>
    %c1_22 = arith.constant 1 : index
    %c0_23 = arith.constant 0 : index
    %c0_24 = arith.constant 0 : index
    %c0_25 = arith.constant 0 : index
    %35 = vector.load %arg5[%c1_22, %c0_23, %c0_24, %c0_25] : memref<3x2x16x128xf32, #tpu.memory_space<vmem>>, vector<1x1x16x128xf32>
    %36 = vector.shape_cast %35 : vector<1x1x16x128xf32> to vector<16x128xf32>
    %cst_26 = arith.constant dense<0.000000e+00> : vector<128x128xf32>
    %37 = tpu.matmul %34, %36, %cst_26 {dimension_numbers = #tpu.dot_dimension_numbers<[1], [0], [0], [1], [0, 0, 1, 1], [], []>} : vector<128x16xf32>, vector<16x128xf32>, vector<128x128xf32> -> vector<128x128xf32>
    %38 = arith.addf %31, %37 : vector<128x128xf32>
    %c1_27 = arith.constant 1 : index
    %c1_28 = arith.constant 1 : index
    %c0_29 = arith.constant 0 : index
    %c0_30 = arith.constant 0 : index
    %39 = vector.load %arg5[%c1_27, %c1_28, %c0_29, %c0_30] : memref<3x2x16x128xf32, #tpu.memory_space<vmem>>, vector<1x1x16x128xf32>
    %40 = vector.shape_cast %39 : vector<1x1x16x128xf32> to vector<16x128xf32>
    %cst_31 = arith.constant dense<0.000000e+00> : vector<128x128xf32>
    %41 = tpu.matmul %15, %40, %cst_31 {dimension_numbers = #tpu.dot_dimension_numbers<[1], [0], [0], [1], [0, 0, 1, 1], [], []>} : vector<128x16xf32>, vector<16x128xf32>, vector<128x128xf32> -> vector<128x128xf32>
    %42 = arith.addf %38, %41 : vector<128x128xf32>
    %43 = vector.extract_strided_slice %16 {offsets = [127, 0], sizes = [1, 16], strides = [1, 1]} : vector<128x16xf32> to vector<1x16xf32>
    %44 = vector.extract_strided_slice %16 {offsets = [0, 0], sizes = [127, 16], strides = [1, 1]} : vector<128x16xf32> to vector<127x16xf32>
    %45 = tpu.concatenate %43, %44 in 0 : vector<1x16xf32>, vector<127x16xf32> -> vector<128x16xf32>
    %c2 = arith.constant 2 : index
    %c0_32 = arith.constant 0 : index
    %c0_33 = arith.constant 0 : index
    %c0_34 = arith.constant 0 : index
    %46 = vector.load %arg5[%c2, %c0_32, %c0_33, %c0_34] : memref<3x2x16x128xf32, #tpu.memory_space<vmem>>, vector<1x1x16x128xf32>
    %47 = vector.shape_cast %46 : vector<1x1x16x128xf32> to vector<16x128xf32>
    %cst_35 = arith.constant dense<0.000000e+00> : vector<128x128xf32>
    %48 = tpu.matmul %45, %47, %cst_35 {dimension_numbers = #tpu.dot_dimension_numbers<[1], [0], [0], [1], [0, 0, 1, 1], [], []>} : vector<128x16xf32>, vector<16x128xf32>, vector<128x128xf32> -> vector<128x128xf32>
    %49 = arith.addf %42, %48 : vector<128x128xf32>
    %c2_36 = arith.constant 2 : index
    %c1_37 = arith.constant 1 : index
    %c0_38 = arith.constant 0 : index
    %c0_39 = arith.constant 0 : index
    %50 = vector.load %arg5[%c2_36, %c1_37, %c0_38, %c0_39] : memref<3x2x16x128xf32, #tpu.memory_space<vmem>>, vector<1x1x16x128xf32>
    %51 = vector.shape_cast %50 : vector<1x1x16x128xf32> to vector<16x128xf32>
    %cst_40 = arith.constant dense<0.000000e+00> : vector<128x128xf32>
    %52 = tpu.matmul %16, %51, %cst_40 {dimension_numbers = #tpu.dot_dimension_numbers<[1], [0], [0], [1], [0, 0, 1, 1], [], []>} : vector<128x16xf32>, vector<16x128xf32>, vector<128x128xf32> -> vector<128x128xf32>
    %53 = arith.addf %49, %52 : vector<128x128xf32>
    %cst_41 = arith.constant 0.000000e+00 : f32
    %54 = vector.broadcast %cst_41 : f32 to vector<128x128xf32>
    %55 = arith.maximumf %53, %54 : vector<128x128xf32>
    %56 = tpu.iota {dimensions = array<i32: 0>} : vector<128x1xi32>
    %c16_i32 = arith.constant 16 : i32
    %c0_i32 = arith.constant 0 : i32
    %57 = arith.cmpi eq, %c16_i32, %c0_i32 : i32
    %c1_i32 = arith.constant 1 : i32
    %58 = arith.select %57, %c1_i32, %c16_i32 : i32
    %59 = vector.broadcast %58 : i32 to vector<128x1xi32>
    %60 = arith.remsi %56, %59 : vector<128x1xi32>
    %c0_i32_42 = arith.constant 0 : i32
    %61 = vector.broadcast %c0_i32_42 : i32 to vector<128x1xi32>
    %62 = arith.cmpi ne, %60, %61 : vector<128x1xi32>
    %c0_i32_43 = arith.constant 0 : i32
    %63 = vector.broadcast %c0_i32_43 : i32 to vector<128x1xi32>
    %64 = arith.cmpi slt, %60, %63 : vector<128x1xi32>
    %c0_i32_44 = arith.constant 0 : i32
    %65 = arith.cmpi slt, %58, %c0_i32_44 : i32
    %66 = vector.broadcast %65 : i1 to vector<128x1xi1>
    %67 = vector.broadcast %66 : vector<128x1xi1> to vector<128x1xi1>
    %68 = arith.xori %64, %67 : vector<128x1xi1>
    %69 = arith.andi %68, %62 : vector<128x1xi1>
    %70 = vector.broadcast %58 : i32 to vector<128x1xi32>
    %71 = arith.addi %60, %70 : vector<128x1xi32>
    %72 = arith.select %69, %71, %60 : vector<128x1xi1>, vector<128x1xi32>
    %c1_i32_45 = arith.constant 1 : i32
    %73 = vector.broadcast %c1_i32_45 : i32 to vector<128x1xi32>
    %74 = arith.cmpi sge, %72, %73 : vector<128x1xi32>
    %c8_i32 = arith.constant 8 : i32
    %75 = vector.broadcast %c8_i32 : i32 to vector<128x1xi32>
    %76 = arith.cmpi sle, %72, %75 : vector<128x1xi32>
    %77 = arith.andi %74, %76 : vector<128x1xi1>
    %cst_46 = arith.constant 0.000000e+00 : f32
    %78 = vector.shape_cast %77 : vector<128x1xi1> to vector<128x1xi1>
    %79 = vector.broadcast %78 : vector<128x1xi1> to vector<128x128xi1>
    %80 = vector.broadcast %cst_46 : f32 to vector<128x128xf32>
    %81 = arith.select %79, %55, %80 : vector<128x128xi1>, vector<128x128xf32>
    %82 = vector.shape_cast %81 : vector<128x128xf32> to vector<8x16x128xf32>
    %c0_47 = arith.constant 0 : index
    %c0_48 = arith.constant 0 : index
    %c0_49 = arith.constant 0 : index
    %c0_50 = arith.constant 0 : index
    %83 = vector.load %arg7[%c0_47, %c0_48, %c0_49, %c0_50] : memref<1x8x16x128xf32, #tpu.memory_space<vmem>>, vector<1x8x16x128xf32>
    %84 = vector.shape_cast %83 : vector<1x8x16x128xf32> to vector<8x16x128xf32>
    %85 = vector.shape_cast %82 : vector<8x16x128xf32> to vector<1x8x16x128xf32>
    tpu.vector_store %arg7[%c0_47, %c0_48, %c0_49, %c0_50], %85 {strides = array<i32>} : memref<1x8x16x128xf32, #tpu.memory_space<vmem>>, vector<1x8x16x128xf32>,
    return
  }
  func.func @transform_0(%arg0: i32, %arg1: i32) -> (i32, i32, i32, i32) {
    %c0_i32 = arith.constant 0 : i32
    %c0_i32_0 = arith.constant 0 : i32
    %c0_i32_1 = arith.constant 0 : i32
    return %arg0, %arg1, %c0_i32, %c0_i32_0 : i32, i32, i32, i32
  }
  func.func @transform_1(%arg0: i32, %arg1: i32) -> (i32, i32, i32, i32) {
    %c1_i32 = arith.constant 1 : i32
    %0 = arith.addi %arg1, %c1_i32 : i32
    %c16_i32 = arith.constant 16 : i32
    %1 = arith.muli %c16_i32, %0 : i32
    %c0_i32 = arith.constant 0 : i32
    %2 = arith.addi %1, %c0_i32 : i32
    %c17_i32 = arith.constant 17 : i32
    %3 = arith.minsi %2, %c17_i32 : i32
    %c0_i32_0 = arith.constant 0 : i32
    %c0_i32_1 = arith.constant 0 : i32
    %c0_i32_2 = arith.constant 0 : i32
    return %arg0, %3, %c0_i32_0, %c0_i32_1 : i32, i32, i32, i32
  }
  func.func @transform_2(%arg0: i32, %arg1: i32) -> (i32, i32, i32, i32) {
    %c1_i32 = arith.constant 1 : i32
    %0 = arith.addi %arg1, %c1_i32 : i32
    %c16_i32 = arith.constant 16 : i32
    %1 = arith.muli %c16_i32, %0 : i32
    %c1_i32_0 = arith.constant 1 : i32
    %2 = arith.addi %1, %c1_i32_0 : i32
    %c17_i32 = arith.constant 17 : i32
    %3 = arith.minsi %2, %c17_i32 : i32
    %c0_i32 = arith.constant 0 : i32
    %c0_i32_1 = arith.constant 0 : i32
    %c0_i32_2 = arith.constant 0 : i32
    return %arg0, %3, %c0_i32, %c0_i32_1 : i32, i32, i32, i32
  }
  func.func @transform_3(%arg0: i32, %arg1: i32) -> (i32, i32, i32, i32) {
    %c0_i32 = arith.constant 0 : i32
    %c0_i32_0 = arith.constant 0 : i32
    %c0_i32_1 = arith.constant 0 : i32
    %c0_i32_2 = arith.constant 0 : i32
    %c0_i32_3 = arith.constant 0 : i32
    return %c0_i32, %c0_i32_0, %c0_i32_1, %c0_i32_2 : i32, i32, i32, i32
  }
  func.func @transform_4(%arg0: i32, %arg1: i32) -> (i32, i32) {
    %c0_i32 = arith.constant 0 : i32
    %c0_i32_0 = arith.constant 0 : i32
    %c0_i32_1 = arith.constant 0 : i32
    return %c0_i32, %c0_i32_0 : i32, i32
  }
  func.func @transform_5(%arg0: i32, %arg1: i32) -> (i32, i32, i32, i32) {
    %c0_i32 = arith.constant 0 : i32
    %c0_i32_0 = arith.constant 0 : i32
    %c0_i32_1 = arith.constant 0 : i32
    return %arg0, %arg1, %c0_i32, %c0_i32_0 : i32, i32, i32, i32
  }
}

</mosaic_0001>

<bundles_post_ra>
// kernel: basic_block_forward.2
= control target key start
LH: loop header
LB: loop body
LE: loop exit
PB: predicated region body
PF: predicated region fallthrough
CT: control target
= control target key end

     0   :  { %s2775_s18 = smov 0   ;;  %s2777_s19 = smov 0   ;;  %s3310_s0 = inlined_call_operand.vmem [shape: f32[2,18,16,16], index: 0, kind: input, shape index: {}, may-alias: {0,1,2}]   ;;  %s3311_s1 = inlined_call_operand.vmem [shape: f32[2,18,16,16], index: 1, kind: input, shape index: {}, may-alias: {0,1,2}]   ;;  %s3312_s2 = inlined_call_operand.vmem [shape: f32[2,18,16,16], index: 2, kind: input, shape index: {}, may-alias: {0,1,2}]   ;;  %s3313_s3 = inlined_call_operand.vmem [shape: f32[3,2,16,128], index: 3, kind: input, shape index: {}]   ;;  %s3314_s4 = inlined_call_operand.vmem [shape: f32[1,128], index: 4, kind: input, shape index: {}]   ;;  %s3315_s5 = inlined_call_operand.vmem [shape: f32[2,8,16,128], index: 5, kind: output, shape index: {}]  }
   0x1   :  { %s2779_s20 = smov 0  }
   0x2 LB: > { %s27_s2 = sadd.s32 1, %s2739_s19  ;;  %p2181_p0 = scmp.ge.s32.totalorder %s2743_s20, 1  ;;  %s2743_s20 = sphi %s2779_s20, %s15_s20   ;;  %s2739_s19 = sphi %s2777_s19, %s3325_s19   ;;  %s2735_s18 = sphi %s2775_s18, %s3324_s18  }
   0x3   : > { %p29_p1 = scmp.ge.s32.totalorder %s27_s2, 2  ;;  %p287_p2 = scmp.lt.s32.totalorder %s2743_s20, 3 }
   0x5   : > { %s3327_s2 = smov (%p29_p1, %s27_s2), 0  ;;  %p288_p3 = pnand %p2181_p0, %p287_p2 }
   0x6   : > { %v2239_v0 = vld [vmem:[%s3313_s3 + $0x30] sm:$0xff] (!%p288_p3)  ;;  %v2240_v1 = vld [vmem:[%s3313_s3 + $0x38] sm:$0xff] (!%p288_p3)  ;;  %v518_v2 = vld [vmem:[%s3313_s3] sm:$0xff] (!%p288_p3)  ;;  %p363_p4 = scmp.lt.s32.totalorder (!%p288_p3), %s2735_s18, 1  ;;  %vm520_vm0 = vcmask (!%p288_p3), 130048   ;;  %vm485_vm1 = vcmask (!%p288_p3), 1040384  }
   0x7   : > { %291 = sbr.rel (%p288_p3) target bundleno = 337 (0x151), region = 40  ;;  %v2586_v3 = vpack.c.bf16 (!%p288_p3), %v2240_v1, %v2239_v0  ;;  %v519_v4 = vld [vmem:[%s3313_s3 + $0x8] sm:$0xff] (!%p288_p3)  ;;  %v2203_v5 = vld [vmem:[%s3313_s3 + $0x10] sm:$0xff] (!%p288_p3)  ;;  %v2204_v6 = vld [vmem:[%s3313_s3 + $0x18] sm:$0xff] (!%p288_p3) }
   0x8   : > { %v2574_v7 = vpack.c.bf16 (!%p288_p3), %v519_v4, %v518_v2  ;;  %v2578_v8 = vpack.c.bf16 (!%p288_p3), %v2204_v6, %v2203_v5  ;;  %v2257_v9 = vld [vmem:[%s3313_s3 + $0x40] sm:$0xff] (!%p288_p3)  ;;  %v2258_v10 = vld [vmem:[%s3313_s3 + $0x48] sm:$0xff] (!%p288_p3)  ;;  %v2275_v12 = vld [vmem:[%s3313_s3 + $0x50] sm:$0xff] (!%p288_p3) }
   0x9   : > { %2587 = vmatprep.subr.bf16.mxu0 (!%p288_p3), %v2586_v3  ;;  %v2590_v11 = vpack.c.bf16 (!%p288_p3), %v2258_v10, %v2257_v9  ;;  %v2276_v13 = vld [vmem:[%s3313_s3 + $0x58] sm:$0xff] (!%p288_p3)  ;;  %v2221_v14 = vld [vmem:[%s3313_s3 + $0x20] sm:$0xff] (!%p288_p3)  ;;  %v2222_v15 = vld [vmem:[%s3313_s3 + $0x28] sm:$0xff] (!%p288_p3) }
   0xa   : > { %2589 = vmatpush3.bf16.msra.mxu0 (!%p288_p3), %v2586_v3  ;;  %2575 = vmatprep.subr.bf16.mxu1 (!%p288_p3), %v2574_v7  ;;  %v2848_v19 = vpack.c.bf16 (!%p288_p3), %v2276_v13, %v2275_v12  ;;  %v2901_v38 = vpack.c.bf16 (!%p288_p3), %v2222_v15, %v2221_v14 }
   0xb   : > { %2577 = vmatpush3.bf16.msra.mxu1 (!%p288_p3), %v2574_v7  ;;  %2591 = vmatprep.subr.bf16.mxu0 (!%p288_p3), %v2590_v11 }
   0xc   : > { %2579 = vmatprep.subr.bf16.mxu1 (!%p288_p3), %v2578_v8 }
   0xe   : > { %s3329_s18 = smov (!%p363_p4, %s2735_s18), 1 }
   0xf   : > { %s2694_s12 = smul.u32 288, %s3329_s18  ;;  %s2297_s8 = sshll.u32 %s3329_s18, 7 }
  0x10   : > { %s3235_s11 = scalar_lea.vmem %s3315_s5, %s2297_s8 }
  0x11   : > { %s2831_s22 = scalar_lea.vmem %s3310_s0, %s2694_s12  ;;  %s2296_s27 = sadd.s32 256, %s2694_s12 }
  0x12   : > { %v2840_v16 = vld [vmem:[%s2831_s22 + $0x10] sm:$0xff]  ;;  %v2843_v17 = vld [vmem:[%s2831_s22 + $0x18] sm:$0xff]  ;;  %v2846_v18 = vld [vmem:[%s2831_s22] sm:$0xff]  ;;  %s3030_s30 = scalar_lea.vmem %s3311_s1, %s2296_s27 }
  0x13   : > { %v929_v20 = vrot.slane %v2840_v16, 7  ;;  %2494 = vmatprep.mubr.msk.f32.mxu0 %vm520_vm0, %v2840_v16  ;;  %v930_v21 = vrot.slane %v2843_v17, 7  ;;  %v2855_v22 = vld [vmem:[%s2831_s22 + $0xe8] sm:$0xff]  ;;  %v486_v23 = vrot.slane %v2846_v18, 7  ;;  %v2862_v25 = vld [vmem:[%s2831_s22 + $0x30] sm:$0xff]  ;;  %v2871_v28 = vld [vmem:[%s2831_s22 + $0x20] sm:$0xff]  ;;  %v1718_v16 = vlaneseq }
  0x14   : > { %v2859_v24 = vld [vmem:[%s2831_s22 + $0x8] sm:$0xff]  ;;  %2495 = vmatmul.mubr.msk.f32.vlgmr.msra.gmra.mrb[0].mxu0 %vm520_vm0, %v2843_v17  ;;  %v2867_v26 = vrot.slane %v2855_v22, 7  ;;  %v2879_v30 = vld [vmem:[%s2831_s22 + $0x38] sm:$0xff]  ;;  %v2882_v31 = vrot.slane %v2871_v28, 7  ;;  %v2886_v33 = vld [vmem:[%s2831_s22 + $0x40] sm:$0xff]  ;;  %v932_v51 = vrot.slane %v2862_v25, 7 }
  0x15   : > { %v487_v27 = vrot.slane %v2859_v24, 7  ;;  %v2874_v29 = vld [vmem:[%s2831_s22 + $0x28] sm:$0xff]  ;;  %2497 = vmatprep.mubr.msk.f32.mxu0 %vm520_vm0, %v2862_v25  ;;  %2593 = vmatpush3.bf16.msra.mxu0 %v2590_v11  ;;  %v2893_v34 = vsel %vm485_vm1, %v929_v20, %v930_v21  ;;  %v2908_v40 = vld [vmem:[%s2831_s22 + $0x50] sm:$0xff]  ;;  %v493_v41 = vrot.slane %v2886_v33, 7  ;;  %v2912_v42 = vld [vmem:[%s2831_s22 + $0x60] sm:$0xff]  ;;  %v934_v53 = vrot.slane %v2879_v30, 7 }
  0x16   : > { %v491_v32 = vrot.slane %v2874_v29, 7  ;;  %v517_v35 = vsel %vm485_vm1, %v2867_v26, %v486_v23  ;;  %v2899_v37 = vld [vmem:[%s2831_s22 + $0x48] sm:$0xff]  ;;  %2595 = vmatprep.subr.bf16.mxu0 %v2848_v19  ;;  %v436_v45 = vld [vmem:[%s2831_s22 + $0x58] sm:$0xff]  ;;  %v439_v48 = vld [vmem:[%s2831_s22 + $0x70] sm:$0xff]  ;;  %v497_v49 = vrot.slane %v2912_v42, 7  ;;  %v936_v54 = vrot.slane %v2908_v40, 7 }
  0x17   : > { %v488_v36 = vsel %vm485_vm1, %v486_v23, %v487_v27  ;;  %2410 = vmatprep.mubr.msk.f32.mxu1 %vm520_vm0, %v517_v35  ;;  %v490_v39 = vsel %vm485_vm1, %v487_v27, %v2882_v31  ;;  %v2918_v43 = vld [vmem:[%s2831_s22 + $0x68] sm:$0xff]  ;;  %v495_v46 = vrot.slane %v2899_v37, 7  ;;  %v2935_v50 = vld [vmem:[%s2831_s22 + $0x80] sm:$0xff]  ;;  %v938_v55 = vrot.slane %v436_v45, 7  ;;  %v440_v57 = vld [vmem:[%s2831_s22 + $0x78] sm:$0xff] }
  0x18   : > { %2411 = vmatmul.mubr.msk.f32.vlgmr.msra.gmra.mrb[0].mxu1 %vm520_vm0, %v488_v36  ;;  %2498 = vmatmul.mubr.msk.f32.gmra.mrb[2].mxu0 %vm520_vm0, %v2879_v30  ;;  %v2923_v44 = vsel %vm485_vm1, %v2882_v31, %v491_v32  ;;  %v2930_v47 = vsel %vm485_vm1, %v491_v32, %v493_v41  ;;  %v499_v52 = vrot.slane %v2918_v43, 7  ;;  %v443_v58 = vld [vmem:[%s2831_s22 + $0x90] sm:$0xff]  ;;  %v501_v59 = vrot.slane %v2935_v50, 7  ;;  %v2955_v60 = vld [vmem:[%s2831_s22 + $0x88] sm:$0xff]  ;;  %v444_v1 = vld [vmem:[%s2831_s22 + $0x98] sm:$0xff] }
  0x19   : > { %2581 = vmatpush3.bf16.msra.mxu1 %v2578_v8  ;;  %2413 = vmatprep.mubr.msk.f32.mxu1 %vm520_vm0, %v490_v39  ;;  %v2948_v56 = vsel %vm485_vm1, %v493_v41, %v495_v46  ;;  %v940_v61 = vrot.slane %v439_v48, 7  ;;  %v942_v62 = vrot.slane %v440_v57, 7  ;;  %v2958_v63 = vsel %vm485_vm1, %v495_v46, %v497_v49  ;;  %v447_v2 = vld [vmem:[%s2831_s22 + $0xb0] sm:$0xff]  ;;  %v2963_v3 = vld [vmem:[%s2831_s22 + $0xa0] sm:$0xff]  ;;  %v448_v7 = vld [vmem:[%s2831_s22 + $0xb8] sm:$0xff] }
  0x1a   : > { %2500 = vmatprep.mubr.msk.f32.mxu0 %vm520_vm0, %v2908_v40  ;;  %2583 = vmatprep.subr.bf16.mxu1 %v2901_v38  ;;  %v944_v0 = vrot.slane %v443_v58, 7  ;;  %v2966_v4 = vsel %vm485_vm1, %v497_v49, %v499_v52  ;;  %v946_v5 = vrot.slane %v444_v1, 7  ;;  %v948_v6 = vrot.slane %v447_v2, 7  ;;  %v451_v8 = vld [vmem:[%s2831_s22 + $0xd0] sm:$0xff]  ;;  %v452_v9 = vld [vmem:[%s2831_s22 + $0xd8] sm:$0xff]  ;;  %v2995_v30 = vld [vmem:[%s2831_s22 + $0xa8] sm:$0xff] }
  0x1b   : > { %v2974_v10 = vsel %vm485_vm1, %v930_v21, %v932_v51  ;;  %v503_v11 = vrot.slane %v2955_v60, 7  ;;  %v950_v12 = vrot.slane %v448_v7, 7  ;;  %v952_v13 = vrot.slane %v451_v8, 7  ;;  %v455_v15 = vld [vmem:[%s2831_s22 + $0xf0] sm:$0xff]  ;;  %v2982_v23 = vld [vmem:[%s2831_s22 + $0xf8] sm:$0xff]  ;;  %v3010_v40 = vld [vmem:[%s2831_s22 + $0xc0] sm:$0xff] }
  0x1c   : > { %2414 = vmatmul.mubr.msk.f32.gmra.mrb[2].mxu1 %vm520_vm0, %v2923_v44  ;;  %2501 = vmatmul.mubr.msk.f32.gmra.mrb[4].mxu0 %vm520_vm0, %v436_v45  ;;  %v954_v14 = vrot.slane %v452_v9, 7  ;;  %v2988_v17 = vsel %vm485_vm1, %v499_v52, %v501_v59  ;;  %v505_v21 = vrot.slane %v2963_v3, 7  ;;  %v956_v25 = vrot.slane %v455_v15, 7 }
  0x1d   : > { %2416 = vmatprep.mubr.msk.f32.mxu1 %vm520_vm0, %v2930_v47  ;;  %2503 = vmatprep.mubr.msk.f32.mxu0 %vm520_vm0, %v439_v48  ;;  %v912_v27 = vrot.slane %v2982_v23, 7  ;;  %v2998_v32 = vsel %vm485_vm1, %v932_v51, %v934_v53  ;;  %v3001_v35 = vsel %vm485_vm1, %v934_v53, %v936_v54  ;;  %v3004_v36 = vsel %vm485_vm1, %v936_v54, %v938_v55 }
  0x1e   : > { %v3007_v39 = vsel %vm485_vm1, %v938_v55, %v940_v61  ;;  %v3013_v41 = vsel %vm485_vm1, %v940_v61, %v942_v62  ;;  %v3016_v45 = vsel %vm485_vm1, %v942_v62, %v944_v0  ;;  %v3019_v46 = vsel %vm485_vm1, %v944_v0, %v946_v5  ;;  %v3057_v62 = vld [vmem:[%s2831_s22 + $0xc8] sm:$0xff]  ;;  %v3060_v0 = vld [vmem:[%s2831_s22 + $0xe0] sm:$0xff] }
  0x1f   : > { %v3022_v48 = vsel %vm485_vm1, %v946_v5, %v948_v6  ;;  %v3033_v49 = vsel %vm485_vm1, %v948_v6, %v950_v12  ;;  %v3036_v51 = vsel %vm485_vm1, %v950_v12, %v952_v13  ;;  %v3039_v52 = vsel %vm485_vm1, %v952_v13, %v954_v14 }
  0x20   : > { %2417 = vmatmul.mubr.msk.f32.gmra.mrb[4].mxu1 %vm520_vm0, %v2948_v56  ;;  %2504 = vmatmul.mubr.msk.f32.gmra.mrb[6].mxu0 %vm520_vm0, %v440_v57  ;;  %v504_v53 = vsel %vm485_vm1, %v501_v59, %v503_v11  ;;  %v507_v54 = vrot.slane %v2995_v30, 7  ;;  %v3047_v55 = vsel %vm485_vm1, %v954_v14, %v956_v25  ;;  %v3052_v57 = vsel %vm485_vm1, %v956_v25, %v912_v27  ;;  %v3063_v59 = vld [vmem:[%s3030_s30 + $0x8] sm:$0xff] }
  0x21   : > { %2419 = vmatprep.mubr.msk.f32.mxu1 %vm520_vm0, %v2958_v63  ;;  %2506 = vmatprep.mubr.msk.f32.mxu0 %vm520_vm0, %v443_v58  ;;  %v506_v58 = vsel %vm485_vm1, %v503_v11, %v505_v21  ;;  %v509_v61 = vrot.slane %v3010_v40, 7  ;;  %v513_v6 = vrot.slane %v3060_v0, 7  ;;  %v1355_v11 = vrot.slane %v3063_v59, 7 }
  0x23   : > { %v510_v5 = vsel %vm485_vm1, %v507_v54, %v509_v61  ;;  %v1362_v12 = vsel %vm485_vm1, %v1355_v11, %v2882_v31 }
  0x24   : > { %2420 = vmatmul.mubr.msk.f32.gmra.mrb[6].mxu1 %vm520_vm0, %v2966_v4  ;;  %2507 = vmatmul.mubr.msk.f32.gmra.mrb[8].mxu0 %vm520_vm0, %v444_v1  ;;  %v508_v1 = vsel %vm485_vm1, %v505_v21, %v507_v54 }
  0x25   : > { %2422 = vmatprep.mubr.msk.f32.mxu1 %vm520_vm0, %v2988_v17  ;;  %2509 = vmatprep.mubr.msk.f32.mxu0 %vm520_vm0, %v447_v2  ;;  %v511_v2 = vrot.slane %v3057_v62, 7 }
  0x28   : > { %2423 = vmatmul.mubr.msk.f32.gmra.mrb[8].mxu1 %vm520_vm0, %v504_v53  ;;  %2510 = vmatmul.mubr.msk.f32.gmra.mrb[10].mxu0 %vm520_vm0, %v448_v7  ;;  %v512_v7 = vsel %vm485_vm1, %v509_v61, %v511_v2 }
  0x29   : > { %2425 = vmatprep.mubr.msk.f32.mxu1 %vm520_vm0, %v506_v58  ;;  %2512 = vmatprep.mubr.msk.f32.mxu0 %vm520_vm0, %v451_v8  ;;  %v514_v8 = vsel %vm485_vm1, %v511_v2, %v513_v6 }
  0x2c   : > { %2426 = vmatmul.mubr.msk.f32.gmra.mrb[10].mxu1 %vm520_vm0, %v508_v1  ;;  %2513 = vmatmul.mubr.msk.f32.gmra.mrb[12].mxu0 %vm520_vm0, %v452_v9  ;;  %v515_v9 = vsel %vm485_vm1, %v513_v6, %v2867_v26 }
  0x2d   : > { %2428 = vmatprep.mubr.msk.f32.mxu1 %vm520_vm0, %v510_v5  ;;  %2515 = vmatprep.mubr.msk.f32.mxu0 %vm520_vm0, %v455_v15 }
  0x30   : > { %2429 = vmatmul.mubr.msk.f32.gmra.mrb[12].mxu1 %vm520_vm0, %v512_v7  ;;  %2516 = vmatmul.mubr.msk.f32.gmra.mrb[14].mxu0 %vm520_vm0, %v2982_v23 }
  0x31   : > { %2431 = vmatprep.mubr.msk.f32.mxu1 %vm520_vm0, %v514_v8  ;;  %2522 = vmatprep.mubr.msk.f32.mxu0 %vm520_vm0, %v1362_v12 }
  0x34   : > { %2432 = vmatmul.mubr.msk.f32.gmra.mrb[14].mxu1 %vm520_vm0, %v515_v9  ;;  %2523 = vmatmul.mubr.msk.f32.vlgmr.msra.gmra.mrb[0].mxu0 %vm520_vm0, %v2923_v44 }
  0x35   : > { %2438 = vmatprep.mubr.msk.f32.mxu1 %vm520_vm0, %v2846_v18  ;;  %2525 = vmatprep.mubr.msk.f32.mxu0 %vm520_vm0, %v2930_v47  ;;  %v457_v18 = vld [vmem:[%s3030_s30] sm:$0xff] }
  0x36   : > { %2597 = vmatpush3.bf16.msra.mxu0 %v2848_v19  ;;  %v1358_v19 = vrot.slane %v457_v18, 7 }
  0x38   : > { %2439 = vmatmul.mubr.msk.f32.vlgmr.msra.gmra.mrb[0].mxu1 %vm520_vm0, %v2859_v24  ;;  %2526 = vmatmul.mubr.msk.f32.gmra.mrb[2].mxu0 %vm520_vm0, %v2948_v56  ;;  %v1359_v24 = vsel %vm485_vm1, %v2867_v26, %v1358_v19  ;;  %v1360_v31 = vsel %vm485_vm1, %v1358_v19, %v1355_v11  ;;  %v960_v26 = vsel %vm485_vm1, %v912_v27, %v929_v20  ;;  %v3216_v20 = vshrl.u32 %v1718_v16, 7 }
  0x39   : > { %2585 = vmatpush3.bf16.msra.mxu1 %v2901_v38  ;;  %2441 = vmatprep.mubr.msk.f32.mxu1 %vm520_vm0, %v2871_v28 }
  0x3a   : > { %2528 = vmatprep.mubr.msk.f32.mxu0 %vm520_vm0, %v2958_v63  ;;  %v1739_v47 = vand.u32 15, %v3216_v20  ;;  %v1721_v56 = vadd.s32 16, %v3216_v20 }
  0x3c   : > { %2442 = vmatmul.mubr.msk.f32.gmra.mrb[2].mxu1 %vm520_vm0, %v2874_v29  ;;  %2529 = vmatmul.mubr.msk.f32.gmra.mrb[4].mxu0 %vm520_vm0, %v2966_v4  ;;  %v1723_v4 = vadd.s32 32, %v3216_v20  ;;  %vm1927_vm3 = vcmp.ge.s32.totalorder %v1739_v47, 1  ;;  %v1753_v25 = vand.u32 15, %v1721_v56 }
  0x3d   : > { %2444 = vmatprep.mubr.msk.f32.mxu1 %vm520_vm0, %v2886_v33  ;;  %2531 = vmatprep.mubr.msk.f32.mxu0 %vm520_vm0, %v2988_v17 }
  0x3e   : > { %vm1929_vm5 = vcmp.ge.s32.totalorder %v1753_v25, 1  ;;  %v1732_v25 = vadd.s32 104, %v3216_v20 }
  0x40   : > { %2445 = vmatmul.mubr.msk.f32.gmra.mrb[4].mxu1 %vm520_vm0, %v2899_v37  ;;  %2532 = vmatmul.mubr.msk.f32.gmra.mrb[6].mxu0 %vm520_vm0, %v504_v53 }
  0x41   : > { %2447 = vmatprep.mubr.msk.f32.mxu1 %vm520_vm0, %v2912_v42  ;;  %2534 = vmatprep.mubr.msk.f32.mxu0 %vm520_vm0, %v506_v58 }
  0x44   : > { %2448 = vmatmul.mubr.msk.f32.gmra.mrb[6].mxu1 %vm520_vm0, %v2918_v43  ;;  %2535 = vmatmul.mubr.msk.f32.gmra.mrb[8].mxu0 %vm520_vm0, %v508_v1 }
  0x45   : > { %2450 = vmatprep.mubr.msk.f32.mxu1 %vm520_vm0, %v2935_v50  ;;  %2537 = vmatprep.mubr.msk.f32.mxu0 %vm520_vm0, %v510_v5 }
  0x48   : > { %2451 = vmatmul.mubr.msk.f32.gmra.mrb[8].mxu1 %vm520_vm0, %v2955_v60  ;;  %2538 = vmatmul.mubr.msk.f32.gmra.mrb[10].mxu0 %vm520_vm0, %v512_v7  ;;  %v1728_v7 = vadd.s32 72, %v3216_v20 }
  0x49   : > { %2453 = vmatprep.mubr.msk.f32.mxu1 %vm520_vm0, %v2963_v3  ;;  %2540 = vmatprep.mubr.msk.f32.mxu0 %vm520_vm0, %v514_v8 }
  0x4c   : > { %2454 = vmatmul.mubr.msk.f32.gmra.mrb[10].mxu1 %vm520_vm0, %v2995_v30  ;;  %2541 = vmatmul.mubr.msk.f32.gmra.mrb[12].mxu0 %vm520_vm0, %v515_v9 }
  0x4d   : > { %2456 = vmatprep.mubr.msk.f32.mxu1 %vm520_vm0, %v3010_v40  ;;  %2543 = vmatprep.mubr.msk.f32.mxu0 %vm520_vm0, %v1359_v24  ;;  %v1727_v24 = vadd.s32 64, %v3216_v20 }
  0x4f   : > { %v1795_v56 = vand.u32 15, %v1727_v24 }
  0x50   : > { %2457 = vmatmul.mubr.msk.f32.gmra.mrb[12].mxu1 %vm520_vm0, %v3057_v62  ;;  %2544 = vmatmul.mubr.msk.f32.gmra.mrb[14].mxu0 %vm520_vm0, %v1360_v31 }
  0x51   : > { %2459 = vmatprep.mubr.msk.f32.mxu1 %vm520_vm0, %v3060_v0  ;;  %2550 = vmatprep.mubr.msk.f32.mxu0 %vm520_vm0, %v2871_v28  ;;  %v1720_v28 = vadd.s32 8, %v3216_v20  ;;  %vm1935_vm11 = vcmp.ge.s32.totalorder %v1795_v56, 1 }
  0x54   : > { %2460 = vmatmul.mubr.msk.f32.gmra.mrb[14].mxu1 %vm520_vm0, %v2855_v22  ;;  %2551 = vmatmul.mubr.msk.f32.vlgmr.msra.gmra.mrb[0].mxu0 %vm520_vm0, %v2874_v29 }
  0x55   : > { %2466 = vmatprep.mubr.msk.f32.mxu1 %vm520_vm0, %v960_v26  ;;  %2553 = vmatprep.mubr.msk.f32.mxu0 %vm520_vm0, %v2886_v33  ;;  %v3222_v33 = vld [vmem:[%s3314_s4] ss:$0 sm:$0xff] }
  0x58   : > { %2467 = vmatmul.mubr.msk.f32.vlgmr.msra.gmra.mrb[0].mxu1 %vm520_vm0, %v2893_v34  ;;  %2554 = vmatmul.mubr.msk.f32.gmra.mrb[2].mxu0 %vm520_vm0, %v2899_v37  ;;  %v1746_v37 = vand.u32 15, %v1720_v28  ;;  %v1730_v28 = vadd.s32 88, %v3216_v20 }
  0x59   : > { %2469 = vmatprep.mubr.msk.f32.mxu1 %vm520_vm0, %v2974_v10  ;;  %2556 = vmatprep.mubr.msk.f32.mxu0 %vm520_vm0, %v2912_v42  ;;  %v1722_v42 = vadd.s32 24, %v3216_v20 }
  0x5a   : > { %vm1944_vm2 = vcmp.le.s32.totalorder %v1746_v37, 8 }
  0x5b   : > { %v1760_v14 = vand.u32 15, %v1722_v42  ;;  %v1802_v42 = vand.u32 15, %v1728_v7 }
  0x5c   : > { %2470 = vmatmul.mubr.msk.f32.gmra.mrb[2].mxu1 %vm520_vm0, %v2998_v32  ;;  %2557 = vmatmul.mubr.msk.f32.gmra.mrb[4].mxu0 %vm520_vm0, %v2918_v43 }
  0x5d   : > { %2472 = vmatprep.mubr.msk.f32.mxu1 %vm520_vm0, %v3001_v35  ;;  %2559 = vmatprep.mubr.msk.f32.mxu0 %vm520_vm0, %v2935_v50  ;;  %vm1946_vm4 = vcmp.le.s32.totalorder %v1760_v14, 8  ;;  %vm1952_vm10 = vcmp.le.s32.totalorder %v1802_v42, 8 }
  0x60   : > { %2473 = vmatmul.mubr.msk.f32.gmra.mrb[4].mxu1 %vm520_vm0, %v3004_v36  ;;  %2560 = vmatmul.mubr.msk.f32.gmra.mrb[6].mxu0 %vm520_vm0, %v2955_v60 }
  0x61   : > { %2475 = vmatprep.mubr.msk.f32.mxu1 %vm520_vm0, %v3007_v39  ;;  %2562 = vmatprep.mubr.msk.f32.mxu0 %vm520_vm0, %v2963_v3  ;;  %v1724_v3 = vadd.s32 40, %v3216_v20 }
  0x63   : > { %v1774_v39 = vand.u32 15, %v1724_v3 }
  0x64   : > { %2476 = vmatmul.mubr.msk.f32.gmra.mrb[6].mxu1 %vm520_vm0, %v3013_v41  ;;  %2563 = vmatmul.mubr.msk.f32.gmra.mrb[8].mxu0 %vm520_vm0, %v2995_v30 }
  0x65   : > { %2478 = vmatprep.mubr.msk.f32.mxu1 %vm520_vm0, %v3016_v45  ;;  %2565 = vmatprep.mubr.msk.f32.mxu0 %vm520_vm0, %v3010_v40  ;;  %v1767_v40 = vand.u32 15, %v1723_v4  ;;  %vm3245_vm6 = vcmp.le.s32.totalorder %v1774_v39, 8 }
  0x67   : > { %vm3249_vm7 = vcmp.ge.s32.totalorder %v1767_v40, 1 }
  0x68   : > { %2479 = vmatmul.mubr.msk.f32.gmra.mrb[8].mxu1 %vm520_vm0, %v3019_v46  ;;  %2566 = vmatmul.mubr.msk.f32.gmra.mrb[10].mxu0 %vm520_vm0, %v3057_v62 }
  0x69   : > { %2481 = vmatprep.mubr.msk.f32.mxu1 %vm520_vm0, %v3022_v48  ;;  %2568 = vmatprep.mubr.msk.f32.mxu0 %vm520_vm0, %v3060_v0 }
  0x6c   : > { %2482 = vmatmul.mubr.msk.f32.gmra.mrb[10].mxu1 %vm520_vm0, %v3033_v49  ;;  %2569 = vmatmul.mubr.msk.f32.gmra.mrb[12].mxu0 %vm520_vm0, %v2855_v22  ;;  %v1726_v49 = vadd.s32 56, %v3216_v20 }
  0x6d   : > { %2484 = vmatprep.mubr.msk.f32.mxu1 %vm520_vm0, %v3036_v51  ;;  %2571 = vmatprep.mubr.msk.f32.mxu0 %vm520_vm0, %v457_v18 }
  0x6e   : > { %v1788_v6 = vand.u32 15, %v1726_v49 }
  0x70   : > { %2485 = vmatmul.mubr.msk.f32.gmra.mrb[12].mxu1 %vm520_vm0, %v3039_v52  ;;  %2572 = vmatmul.mubr.msk.f32.gmra.mrb[14].mxu0 %vm520_vm0, %v3063_v59  ;;  %vm1950_vm8 = vcmp.le.s32.totalorder %v1788_v6, 8  ;;  %v1733_v59 = vadd.s32 112, %v3216_v20 }
  0x71   : > { %2487 = vmatprep.mubr.msk.f32.mxu1 %vm520_vm0, %v3047_v55  ;;  %v1725_v55 = vadd.s32 48, %v3216_v20 }
  0x73   : > { %v1781_v18 = vand.u32 15, %v1725_v55  ;;  %v1734_v55 = vadd.s32 120, %v3216_v20 }
  0x74   : > { %2488 = vmatmul.mubr.msk.f32.gmra.mrb[14].mxu1 %vm520_vm0, %v3052_v57 }
  0x75   : > { %vm1933_vm9 = vcmp.ge.s32.totalorder %v1781_v18, 1 }
 0x127   : > { %v2552_v22 = vpop.f32.mrb[0].mxu0 }
 0x128   : > { %v1607_v29 = vpop.f32.mrb[1].mxu0 }
 0x12b   : > { %v2468_v34 = vpop.f32.mrb[0].mxu1  ;;  %v2555_v38 = vpop.f32.mrb[2].mxu0 }
 0x12c   : > { %v2598_v43 = vadd.f32 %v2468_v34, %v3222_v33  ;;  %v1063_v44 = vpop.f32.mrb[1].mxu1  ;;  %v1617_v50 = vpop.f32.mrb[3].mxu0 }
 0x12d   : > { %v2600_v60 = vadd.f32 %v3222_v33, %v1063_v44 }
 0x12e   : > { %v2599_v63 = vadd.f32 %v2598_v43, %v2552_v22 }
 0x12f   : > { %v2601_v10 = vadd.f32 %v2600_v60, %v1607_v29  ;;  %v2471_v13 = vpop.f32.mrb[2].mxu1  ;;  %v2558_v15 = vpop.f32.mrb[4].mxu0  ;;  %v1729_v29 = vadd.s32 80, %v3216_v20 }
 0x130   : > { %v1703_v23 = vmax.f32 %v2599_v63, 0.0  ;;  %v2602_v17 = vadd.f32 %v2471_v13, %v3222_v33  ;;  %v1073_v21 = vpop.f32.mrb[3].mxu1  ;;  %v1627_v27 = vpop.f32.mrb[5].mxu0  ;;  %v1816_v13 = vand.u32 15, %v1730_v28 }
 0x131   : > { %v1702_v30 = vmax.f32 %v2601_v10, 0.0  ;;  %v2604_v32 = vadd.f32 %v3222_v33, %v1073_v21  ;;  %v1809_v14 = vand.u32 15, %v1729_v29 }
 0x132   : > { %v2008_v35 = vsel %vm1944_vm2, %v1703_v23, 0.0  ;;  %v2603_v36 = vadd.f32 %v2602_v17, %v2555_v38  ;;  %vm3275_vm12 = vcmp.le.s32.totalorder %v1816_v13, 8 }
 0x133   : > { %2024 = vst [vmem:[%s3235_s11 + $0x8] sm:$0xff] %v2008_v35  ;;  %v2007_v41 = vsel %vm1927_vm3, %v1702_v30, 0.0  ;;  %v2605_v45 = vadd.f32 %v2604_v32, %v1617_v50  ;;  %v2474_v46 = vpop.f32.mrb[4].mxu1  ;;  %v2561_v48 = vpop.f32.mrb[6].mxu0  ;;  %vm3279_vm13 = vcmp.ge.s32.totalorder %v1809_v14, 1 }
 0x134   : > { %2023 = vst [vmem:[%s3235_s11] sm:$0xff] %v2007_v41  ;;  %v1705_v51 = vmax.f32 %v2603_v36, 0.0  ;;  %v2606_v52 = vadd.f32 %v2474_v46, %v3222_v33  ;;  %v1083_v53 = vpop.f32.mrb[5].mxu1  ;;  %v1637_v54 = vpop.f32.mrb[7].mxu0  ;;  %v1731_v36 = vadd.s32 96, %v3216_v20 }
 0x135   : > { %v1704_v57 = vmax.f32 %v2605_v45, 0.0  ;;  %v2608_v58 = vadd.f32 %v3222_v33, %v1083_v53  ;;  %v1830_v53 = vand.u32 15, %v1732_v25 }
 0x136   : > { %v2010_v61 = vsel %vm1946_vm4, %v1705_v51, 0.0  ;;  %v2607_v62 = vadd.f32 %v2606_v52, %v2558_v15 }
 0x137   : > { %2026 = vst [vmem:[%s3235_s11 + $0x18] sm:$0xff] %v2010_v61  ;;  %v2009_v1 = vsel %vm1929_vm5, %v1704_v57, 0.0  ;;  %v2609_v2 = vadd.f32 %v2608_v58, %v1627_v27  ;;  %v2477_v5 = vpop.f32.mrb[6].mxu1  ;;  %v2564_v11 = vpop.f32.mrb[8].mxu0  ;;  %vm1956_vm14 = vcmp.le.s32.totalorder %v1830_v53, 8 }
 0x138   : > { %2025 = vst [vmem:[%s3235_s11 + $0x10] sm:$0xff] %v2009_v1  ;;  %v1707_v8 = vmax.f32 %v2607_v62, 0.0  ;;  %v2610_v12 = vadd.f32 %v2477_v5, %v3222_v33  ;;  %v1093_v9 = vpop.f32.mrb[7].mxu1  ;;  %v1647_v19 = vpop.f32.mrb[9].mxu0  ;;  %v1823_v62 = vand.u32 15, %v1731_v36 }
 0x139   : > { %v1706_v31 = vmax.f32 %v2609_v2, 0.0  ;;  %v2612_v26 = vadd.f32 %v3222_v33, %v1093_v9 }
 0x13a   : > { %v2012_v16 = vsel %vm3245_vm6, %v1707_v8, 0.0  ;;  %v2611_v22 = vadd.f32 %v2610_v12, %v2561_v48  ;;  %v1844_v12 = vand.u32 15, %v1734_v55  ;;  %vm1939_vm15 = vcmp.ge.s32.totalorder %v1823_v62, 1 }
 0x13b   : > { %2028 = vst [vmem:[%s3235_s11 + $0x28] sm:$0xff] %v2012_v16  ;;  %v2011_v34 = vsel %vm3249_vm7, %v1706_v31, 0.0  ;;  %v2613_v37 = vadd.f32 %v2612_v26, %v1637_v54  ;;  %v2480_v38 = vpop.f32.mrb[8].mxu1  ;;  %v2567_v43 = vpop.f32.mrb[10].mxu0 }
 0x13c   : > { %2027 = vst [vmem:[%s3235_s11 + $0x20] sm:$0xff] %v2011_v34  ;;  %v1709_v44 = vmax.f32 %v2611_v22, 0.0  ;;  %v2614_v47 = vadd.f32 %v2480_v38, %v3222_v33  ;;  %v1103_v50 = vpop.f32.mrb[9].mxu1  ;;  %v1657_v60 = vpop.f32.mrb[11].mxu0  ;;  %vm1958_vm0 = vcmp.le.s32.totalorder %v1844_v12, 8 }
 0x13d   : > { %v1708_v63 = vmax.f32 %v2613_v37, 0.0  ;;  %v2616_v3 = vadd.f32 %v3222_v33, %v1103_v50 }
 0x13e   : > { %v2014_v4 = vsel %vm1950_vm8, %v1709_v44, 0.0  ;;  %v2615_v10 = vadd.f32 %v2614_v47, %v2564_v11 }
 0x13f   : > { %2030 = vst [vmem:[%s3235_s11 + $0x38] sm:$0xff] %v2014_v4  ;;  %v2013_v15 = vsel %vm1933_vm9, %v1708_v63, 0.0  ;;  %v2617_v23 = vadd.f32 %v2616_v3, %v1647_v19  ;;  %v2483_v17 = vpop.f32.mrb[10].mxu1  ;;  %v2570_v21 = vpop.f32.mrb[12].mxu0  ;;  %v1837_v19 = vand.u32 15, %v1733_v59 }
 0x140   : > { %2029 = vst [vmem:[%s3235_s11 + $0x30] sm:$0xff] %v2013_v15  ;;  %v1711_v27 = vmax.f32 %v2615_v10, 0.0  ;;  %v2618_v30 = vadd.f32 %v2483_v17, %v3222_v33  ;;  %v1113_v32 = vpop.f32.mrb[11].mxu1  ;;  %v1667_v35 = vpop.f32.mrb[13].mxu0 }
 0x141   : > { %v1710_v39 = vmax.f32 %v2617_v23, 0.0  ;;  %v2620_v40 = vadd.f32 %v3222_v33, %v1113_v32  ;;  %vm1941_vm1 = vcmp.ge.s32.totalorder %v1837_v19, 1 }
 0x142   : > { %v2016_v41 = vsel %vm1952_vm10, %v1711_v27, 0.0  ;;  %v2619_v45 = vadd.f32 %v2618_v30, %v2567_v43 }
 0x143   : > { %2032 = vst [vmem:[%s3235_s11 + $0x48] sm:$0xff] %v2016_v41  ;;  %v2015_v49 = vsel %vm1935_vm11, %v1710_v39, 0.0  ;;  %v2621_v51 = vadd.f32 %v2620_v40, %v1657_v60  ;;  %v2486_v52 = vpop.f32.mrb[12].mxu1  ;;  %v2573_v54 = vpop.f32.mrb[14].mxu0 }
 0x144   : > { %2031 = vst [vmem:[%s3235_s11 + $0x40] sm:$0xff] %v2015_v49  ;;  %v1713_v57 = vmax.f32 %v2619_v45, 0.0  ;;  %v2622_v58 = vadd.f32 %v2486_v52, %v3222_v33  ;;  %v1123_v61 = vpop.f32.mrb[13].mxu1  ;;  %v1677_v0 = vpop.f32.mrb[15].mxu0 }
 0x145   : > { %v1712_v1 = vmax.f32 %v2621_v51, 0.0  ;;  %v2624_v2 = vadd.f32 %v3222_v33, %v1123_v61 }
 0x146   : > { %v2018_v5 = vsel %vm3275_vm12, %v1713_v57, 0.0  ;;  %v2623_v6 = vadd.f32 %v2622_v58, %v2570_v21 }
 0x147   : > { %2034 = vst [vmem:[%s3235_s11 + $0x58] sm:$0xff] %v2018_v5  ;;  %v2017_v11 = vsel %vm3279_vm13, %v1712_v1, 0.0  ;;  %v2625_v7 = vadd.f32 %v2624_v2, %v1667_v35  ;;  %v2489_v8 = vpop.f32.mrb[14].mxu1 }
 0x148   : > { %2033 = vst [vmem:[%s3235_s11 + $0x50] sm:$0xff] %v2017_v11  ;;  %v1715_v9 = vmax.f32 %v2623_v6, 0.0  ;;  %v2626_v20 = vadd.f32 %v2489_v8, %v3222_v33  ;;  %v1133_v18 = vpop.f32.mrb[15].mxu1 }
 0x149   : > { %v1714_v24 = vmax.f32 %v2625_v7, 0.0  ;;  %v2628_v31 = vadd.f32 %v3222_v33, %v1133_v18 }
 0x14a   : > { %v2020_v26 = vsel %vm1956_vm14, %v1715_v9, 0.0  ;;  %v2627_v16 = vadd.f32 %v2626_v20, %v2573_v54 }
 0x14b   : > { %2036 = vst [vmem:[%s3235_s11 + $0x68] sm:$0xff] %v2020_v26  ;;  %v2019_v22 = vsel %vm1939_vm15, %v1714_v24, 0.0  ;;  %v2629_v28 = vadd.f32 %v2628_v31, %v1677_v0 }
 0x14c   : > { %2035 = vst [vmem:[%s3235_s11 + $0x60] sm:$0xff] %v2019_v22  ;;  %v1717_v29 = vmax.f32 %v2627_v16, 0.0 }
 0x14d   : > { %v1716_v34 = vmax.f32 %v2629_v28, 0.0 }
 0x14e   : > { %v2022_v37 = vsel %vm1958_vm0, %v1717_v29, 0.0 }
 0x14f   : > { %2038 = vst [vmem:[%s3235_s11 + $0x78] sm:$0xff] %v2022_v37  ;;  %v2021_v38 = vsel %vm1941_vm1, %v1716_v34, 0.0 }
 0x150   : > { %2037 = vst [vmem:[%s3235_s11 + $0x70] sm:$0xff] %v2021_v38 }
 0x151 PF: > { %s15_s20 = sadd.s32 1, %s2743_s20   ;;  %s3324_s18 = smov %s2739_s19 }
 0x152   : > { %p12_p5 = scmp.ge.s32.totalorder %s15_s20, 4   ;;  %s3325_s19 = smov %s3327_s2 }
 0x154   :  { %14 = sbr.rel (!%p12_p5) target bundleno = 2 (0x2), region = 81 }

// kernel: basic_block_forward.3
= control target key start
LH: loop header
LB: loop body
LE: loop exit
PB: predicated region body
PF: predicated region fallthrough
CT: control target
= control target key end

     0   :  { %s3129_s18 = smov 0   ;;  %s3131_s19 = smov 0   ;;  %s4257_s0 = inlined_call_operand.vmem [shape: f32[2,8,16,128], index: 0, kind: input, shape index: {}, may-alias: {0,1,2}]   ;;  %s4258_s1 = inlined_call_operand.vmem [shape: f32[2,8,16,128], index: 1, kind: input, shape index: {}, may-alias: {0,1,2}]   ;;  %s4259_s2 = inlined_call_operand.vmem [shape: f32[2,8,16,128], index: 2, kind: input, shape index: {}, may-alias: {0,1,2}]   ;;  %s4260_s3 = inlined_call_operand.vmem [shape: f32[3,384,128], index: 3, kind: input, shape index: {}]   ;;  %s4261_s4 = inlined_call_operand.vmem [shape: f32[1,128], index: 4, kind: input, shape index: {}]   ;;  %s4262_s5 = inlined_call_operand.vmem [shape: f32[2,8,16,128], index: 5, kind: output, shape index: {}]  }
   0x1   :  { %s3133_s0 = smov 0  }
   0x2 LB: > { %s27_s2 = sadd.s32 1, %s3092_s19  ;;  %p2128_p0 = scmp.ge.s32.totalorder %s3096_s0, 1  ;;  %s3096_s0 = sphi %s3133_s0, %s15_s0   ;;  %s3092_s19 = sphi %s3131_s19, %s4292_s19   ;;  %s3088_s18 = sphi %s3129_s18, %s4291_s18  }
   0x3   : > { %p29_p1 = scmp.ge.s32.totalorder %s27_s2, 2  ;;  %p273_p2 = scmp.lt.s32.totalorder %s3096_s0, 3 }
   0x5   : > { %s4294_s2 = smov (%p29_p1, %s27_s2), 0  ;;  %p274_p3 = pnand %p2128_p0, %p273_p2 }
   0x6   : > { %v533_v0 = vld [vmem:[%s4260_s3 + $0x80] sm:$0xff] (!%p274_p3)  ;;  %v534_v1 = vld [vmem:[%s4260_s3 + $0x88] sm:$0xff] (!%p274_p3)  ;;  %v535_v9 = vld [vmem:[%s4260_s3 + $0x90] sm:$0xff] (!%p274_p3)  ;;  %p355_p4 = scmp.lt.s32.totalorder (!%p274_p3), %s3088_s18, 1  ;;  %v3098_v48 = vmov (!%p274_p3), 0.0   ;;  %vm455_vm0 = vcmask (!%p274_p3), 1040384  }
   0x7   : > { %277 = sbr.rel (%p274_p3) target bundleno = 402 (0x192), region = 40  ;;  %v549_v2 = vld [vmem:[%s4260_s3 + $0x100] sm:$0xff] (!%p274_p3)  ;;  %v2745_v3 = vpack.c.bf16 (!%p274_p3), %v534_v1, %v533_v0  ;;  %v550_v4 = vld [vmem:[%s4260_s3 + $0x108] sm:$0xff] (!%p274_p3)  ;;  %v536_v10 = vld [vmem:[%s4260_s3 + $0x98] sm:$0xff] (!%p274_p3)  ;;  %v3266_v49 = vrot.slane (!%p274_p3), %v3098_v48, 7  ;;  %vm1226_vm1 = vcmask (!%p274_p3), 1046528  }
   0x8   : > { %v517_v5 = vld [vmem:[%s4260_s3] sm:$0xff] (!%p274_p3)  ;;  %v518_v6 = vld [vmem:[%s4260_s3 + $0x8] sm:$0xff] (!%p274_p3)  ;;  %v2777_v7 = vpack.c.bf16 (!%p274_p3), %v550_v4, %v549_v2  ;;  %v551_v11 = vld [vmem:[%s4260_s3 + $0x110] sm:$0xff] (!%p274_p3)  ;;  %v2749_v12 = vpack.c.bf16 (!%p274_p3), %v536_v10, %v535_v9 }
   0x9   : > { %v2747_v8 = vpack.c.bf16 (!%p274_p3), %v518_v6, %v517_v5  ;;  %2746 = vmatprep.subr.bf16.mxu0 (!%p274_p3), %v2745_v3  ;;  %v552_v13 = vld [vmem:[%s4260_s3 + $0x118] sm:$0xff] (!%p274_p3)  ;;  %v519_v14 = vld [vmem:[%s4260_s3 + $0x10] sm:$0xff] (!%p274_p3)  ;;  %v537_v18 = vld [vmem:[%s4260_s3 + $0xa0] sm:$0xff] (!%p274_p3) }
   0xa   : > { %v520_v15 = vld [vmem:[%s4260_s3 + $0x18] sm:$0xff] (!%p274_p3)  ;;  %2778 = vmatprep.subr.bf16.mxu1 (!%p274_p3), %v2777_v7  ;;  %v2781_v16 = vpack.c.bf16 (!%p274_p3), %v552_v13, %v551_v11  ;;  %v538_v19 = vld [vmem:[%s4260_s3 + $0xa8] sm:$0xff] (!%p274_p3)  ;;  %v553_v20 = vld [vmem:[%s4260_s3 + $0x120] sm:$0xff] (!%p274_p3) }
   0xb   : > { %2748 = vmatpush3.bf16.msra.mxu0 (!%p274_p3), %v2747_v8  ;;  %v2751_v17 = vpack.c.bf16 (!%p274_p3), %v520_v15, %v519_v14  ;;  %2780 = vmatpush3.bf16.msra.mxu1 (!%p274_p3), %v2777_v7  ;;  %v2753_v21 = vpack.c.bf16 (!%p274_p3), %v538_v19, %v537_v18  ;;  %v554_v22 = vld [vmem:[%s4260_s3 + $0x128] sm:$0xff] (!%p274_p3)  ;;  %v521_v23 = vld [vmem:[%s4260_s3 + $0x20] sm:$0xff] (!%p274_p3)  ;;  %v539_v26 = vld [vmem:[%s4260_s3 + $0xb0] sm:$0xff] (!%p274_p3) }
   0xc   : > { %2750 = vmatprep.subr.bf16.mxu0 (!%p274_p3), %v2749_v12  ;;  %v522_v24 = vld [vmem:[%s4260_s3 + $0x28] sm:$0xff] (!%p274_p3)  ;;  %2782 = vmatprep.subr.bf16.mxu1 (!%p274_p3), %v2781_v16  ;;  %v2785_v25 = vpack.c.bf16 (!%p274_p3), %v554_v22, %v553_v20  ;;  %v540_v27 = vld [vmem:[%s4260_s3 + $0xb8] sm:$0xff] (!%p274_p3)  ;;  %v555_v28 = vld [vmem:[%s4260_s3 + $0x130] sm:$0xff] (!%p274_p3) }
   0xd   : > { %v556_v29 = vld [vmem:[%s4260_s3 + $0x138] sm:$0xff] (!%p274_p3)  ;;  %v2755_v30 = vpack.c.bf16 (!%p274_p3), %v522_v24, %v521_v23  ;;  %v2757_v31 = vpack.c.bf16 (!%p274_p3), %v540_v27, %v539_v26  ;;  %v523_v32 = vld [vmem:[%s4260_s3 + $0x30] sm:$0xff] (!%p274_p3)  ;;  %v541_v35 = vld [vmem:[%s4260_s3 + $0xc0] sm:$0xff] (!%p274_p3) }
   0xe   : > { %s4296_s18 = smov (!%p355_p4, %s3088_s18), 1  ;;  %v524_v33 = vld [vmem:[%s4260_s3 + $0x38] sm:$0xff]  ;;  %v2789_v34 = vpack.c.bf16 %v556_v29, %v555_v28  ;;  %v542_v36 = vld [vmem:[%s4260_s3 + $0xc8] sm:$0xff]  ;;  %v557_v37 = vld [vmem:[%s4260_s3 + $0x140] sm:$0xff] }
   0xf   : > { %2752 = vmatpush3.bf16.msra.mxu0 %v2751_v17  ;;  %2784 = vmatpush3.bf16.msra.mxu1 %v2781_v16  ;;  %s2237_s26 = sshll.u32 %s4296_s18, 7  ;;  %v558_v38 = vld [vmem:[%s4260_s3 + $0x148] sm:$0xff]  ;;  %v2759_v39 = vpack.c.bf16 %v524_v33, %v523_v32  ;;  %v2761_v40 = vpack.c.bf16 %v542_v36, %v541_v35  ;;  %v525_v41 = vld [vmem:[%s4260_s3 + $0x40] sm:$0xff]  ;;  %v543_v44 = vld [vmem:[%s4260_s3 + $0xd0] sm:$0xff] }
  0x10   : > { %2754 = vmatprep.subr.bf16.mxu0 %v2753_v21  ;;  %2786 = vmatprep.subr.bf16.mxu1 %v2785_v25  ;;  %v526_v42 = vld [vmem:[%s4260_s3 + $0x48] sm:$0xff]  ;;  %s3251_s12 = scalar_lea.vmem %s4258_s1, %s2237_s26  ;;  %v2793_v43 = vpack.c.bf16 %v558_v38, %v557_v37  ;;  %v544_v45 = vld [vmem:[%s4260_s3 + $0xd8] sm:$0xff]  ;;  %v559_v46 = vld [vmem:[%s4260_s3 + $0x150] sm:$0xff]  ;;  %s4165_s7 = scalar_lea.vmem %s4262_s5, %s2237_s26 }
  0x11   : > { %v560_v47 = vld [vmem:[%s4260_s3 + $0x158] sm:$0xff]  ;;  %v2763_v50 = vpack.c.bf16 %v526_v42, %v525_v41  ;;  %v3269_v51 = vld [vmem:[%s3251_s12] sm:$0xff]  ;;  %v3275_v53 = vld [vmem:[%s3251_s12 + $0x10] sm:$0xff]  ;;  %v2765_v54 = vpack.c.bf16 %v544_v45, %v543_v44 }
  0x12   : > { %v3272_v52 = vld [vmem:[%s3251_s12 + $0x78] sm:$0xff]  ;;  %v527_v55 = vld [vmem:[%s4260_s3 + $0x50] sm:$0xff]  ;;  %v3287_v58 = vrot.slane %v3269_v51, 7  ;;  %v3290_v59 = vrot.slane %v3275_v53, 7  ;;  %v2797_v60 = vpack.c.bf16 %v560_v47, %v559_v46  ;;  %v545_v61 = vld [vmem:[%s4260_s3 + $0xe0] sm:$0xff] }
  0x13   : > { %2756 = vmatpush3.bf16.msra.mxu0 %v2755_v30  ;;  %2788 = vmatpush3.bf16.msra.mxu1 %v2785_v25  ;;  %v528_v56 = vld [vmem:[%s4260_s3 + $0x58] sm:$0xff]  ;;  %v3284_v57 = vrot.slane %v3272_v52, 7  ;;  %v546_v62 = vld [vmem:[%s4260_s3 + $0xe8] sm:$0xff]  ;;  %v561_v63 = vld [vmem:[%s4260_s3 + $0x160] sm:$0xff] }
  0x14   : > { %2758 = vmatprep.subr.bf16.mxu0 %v2757_v31  ;;  %2790 = vmatprep.subr.bf16.mxu1 %v2789_v34  ;;  %v562_v0 = vld [vmem:[%s4260_s3 + $0x168] sm:$0xff]  ;;  %v516_v2 = vsel %vm455_vm0, %v3266_v49, %v3290_v59  ;;  %v2767_v3 = vpack.c.bf16 %v528_v56, %v527_v55  ;;  %v2769_v4 = vpack.c.bf16 %v546_v62, %v545_v61  ;;  %v529_v5 = vld [vmem:[%s4260_s3 + $0x60] sm:$0xff]  ;;  %v547_v8 = vld [vmem:[%s4260_s3 + $0xf0] sm:$0xff] }
  0x15   : > { %v515_v1 = vsel %vm455_vm0, %v3284_v57, %v3287_v58  ;;  %v530_v6 = vld [vmem:[%s4260_s3 + $0x68] sm:$0xff]  ;;  %v2801_v7 = vpack.c.bf16 %v562_v0, %v561_v63  ;;  %v548_v9 = vld [vmem:[%s4260_s3 + $0xf8] sm:$0xff]  ;;  %2609 = vmatprep.mubr.f32.mxu1 %v516_v2  ;;  %v563_v10 = vld [vmem:[%s4260_s3 + $0x170] sm:$0xff] }
  0x16   : > { %629 = vmatprep.mubr.f32.mxu0 %v515_v1  ;;  %v564_v11 = vld [vmem:[%s4260_s3 + $0x178] sm:$0xff]  ;;  %v2771_v12 = vpack.c.bf16 %v530_v6, %v529_v5  ;;  %v2773_v13 = vpack.c.bf16 %v548_v9, %v547_v8  ;;  %v531_v14 = vld [vmem:[%s4260_s3 + $0x70] sm:$0xff]  ;;  %v3335_v16 = vld [vmem:[%s3251_s12 + $0x68] sm:$0xff] }
  0x17   : > { %2760 = vmatpush3.bf16.msra.mxu0 %v2759_v39  ;;  %2792 = vmatpush3.bf16.msra.mxu1 %v2789_v34  ;;  %v532_v15 = vld [vmem:[%s4260_s3 + $0x78] sm:$0xff]  ;;  %v2805_v17 = vpack.c.bf16 %v564_v11, %v563_v10  ;;  %v2202_v19 = vld [vmem:[%s4260_s3 + $0x380] sm:$0xff]  ;;  %v2203_v20 = vld [vmem:[%s4260_s3 + $0x388] sm:$0xff]  ;;  %v3356_v25 = vrot.slane %v3335_v16, 7 }
  0x18   : > { %2762 = vmatprep.subr.bf16.mxu0 %v2761_v40  ;;  %2794 = vmatprep.subr.bf16.mxu1 %v2793_v43  ;;  %v3338_v18 = vld [vmem:[%s3251_s12 + $0x18] sm:$0xff]  ;;  %v2154_v21 = vld [vmem:[%s4260_s3 + $0x200] sm:$0xff]  ;;  %v2155_v22 = vld [vmem:[%s4260_s3 + $0x208] sm:$0xff]  ;;  %v2775_v24 = vpack.c.bf16 %v532_v15, %v531_v14  ;;  %v2873_v28 = vpack.c.bf16 %v2203_v20, %v2202_v19 }
  0x19   : > { %v3353_v23 = vld [vmem:[%s3251_s12 + $0x8] sm:$0xff]  ;;  %v3359_v26 = vld [vmem:[%s3251_s12 + $0x20] sm:$0xff]  ;;  %v463_v27 = vrot.slane %v3338_v18, 7  ;;  %v2809_v31 = vpack.c.bf16 %v2155_v22, %v2154_v21  ;;  %v2156_v37 = vld [vmem:[%s4260_s3 + $0x210] sm:$0xff]  ;;  %v514_v40 = vsel %vm455_vm0, %v3356_v25, %v3266_v49 }
  0x1a   : > { %v2186_v29 = vld [vmem:[%s4260_s3 + $0x300] sm:$0xff]  ;;  %v2187_v30 = vld [vmem:[%s4260_s3 + $0x308] sm:$0xff]  ;;  %v461_v34 = vrot.slane %v3353_v23, 7  ;;  %v467_v36 = vrot.slane %v3359_v26, 7  ;;  %v2157_v38 = vld [vmem:[%s4260_s3 + $0x218] sm:$0xff] }
  0x1b   : > { %2764 = vmatpush3.bf16.msra.mxu0 %v2763_v50  ;;  %2796 = vmatpush3.bf16.msra.mxu1 %v2793_v43  ;;  %v2138_v32 = vld [vmem:[%s4260_s3 + $0x180] sm:$0xff]  ;;  %v2139_v33 = vld [vmem:[%s4260_s3 + $0x188] sm:$0xff]  ;;  %v3386_v39 = vld [vmem:[%s3251_s12 + $0x30] sm:$0xff]  ;;  %v2875_v41 = vpack.c.bf16 %v2187_v30, %v2186_v29  ;;  %v3399_v44 = vsel %vm455_vm0, %v3290_v59, %v463_v27  ;;  %v2813_v55 = vpack.c.bf16 %v2157_v38, %v2156_v37 }
  0x1c   : > { %2766 = vmatprep.subr.bf16.mxu0 %v2765_v54  ;;  %2798 = vmatprep.subr.bf16.mxu1 %v2797_v60  ;;  %v3376_v35 = vld [vmem:[%s3251_s12 + $0x28] sm:$0xff]  ;;  %v2204_v42 = vld [vmem:[%s4260_s3 + $0x390] sm:$0xff]  ;;  %v2205_v43 = vld [vmem:[%s4260_s3 + $0x398] sm:$0xff]  ;;  %v2811_v45 = vpack.c.bf16 %v2139_v33, %v2138_v32  ;;  %v3410_v54 = vsel %vm455_vm0, %v3287_v58, %v461_v34  ;;  %v471_v56 = vrot.slane %v3386_v39, 7  ;;  %v3423_v63 = vsel %vm455_vm0, %v463_v27, %v467_v36 }
  0x1d   : > { %v469_v46 = vrot.slane %v3376_v35, 7  ;;  %v2140_v47 = vld [vmem:[%s4260_s3 + $0x190] sm:$0xff]  ;;  %v2141_v50 = vld [vmem:[%s4260_s3 + $0x198] sm:$0xff]  ;;  %v2158_v61 = vld [vmem:[%s4260_s3 + $0x220] sm:$0xff]  ;;  %v2877_v0 = vpack.c.bf16 %v2205_v43, %v2204_v42  ;;  %v3447_v8 = vsel %vm455_vm0, %v461_v34, %v3290_v59  ;;  %v465_v27 = vsel %vm455_vm0, %v3266_v49, %v3287_v58 }
  0x1e   : > { %v2159_v62 = vld [vmem:[%s4260_s3 + $0x228] sm:$0xff]  ;;  %v2188_v1 = vld [vmem:[%s4260_s3 + $0x310] sm:$0xff]  ;;  %v2189_v2 = vld [vmem:[%s4260_s3 + $0x318] sm:$0xff] }
  0x1f   : > { %2768 = vmatpush3.bf16.msra.mxu0 %v2767_v3  ;;  %2800 = vmatpush3.bf16.msra.mxu1 %v2797_v60  ;;  %v3414_v60 = vld [vmem:[%s3251_s12 + $0x38] sm:$0xff]  ;;  %v3432_v3 = vld [vmem:[%s3251_s12 + $0x40] sm:$0xff]  ;;  %v2207_v5 = vld [vmem:[%s4260_s3 + $0x3a8] sm:$0xff]  ;;  %v3443_v6 = vsel %vm455_vm0, %v467_v36, %v469_v46  ;;  %v2879_v14 = vpack.c.bf16 %v2189_v2, %v2188_v1  ;;  %v3544_v2 = vrot.slane %v3275_v53, 1 }
  0x20   : > { %2770 = vmatprep.subr.bf16.mxu0 %v2769_v4  ;;  %2802 = vmatprep.subr.bf16.mxu1 %v2801_v7  ;;  %v2206_v4 = vld [vmem:[%s4260_s3 + $0x3a0] sm:$0xff]  ;;  %v473_v9 = vrot.slane %v3414_v60, 7  ;;  %v2143_v11 = vld [vmem:[%s4260_s3 + $0x1a8] sm:$0xff]  ;;  %v475_v59 = vrot.slane %v3432_v3, 7  ;;  %v2161_v19 = vld [vmem:[%s4260_s3 + $0x238] sm:$0xff] }
  0x21   : > { %v2142_v10 = vld [vmem:[%s4260_s3 + $0x1a0] sm:$0xff]  ;;  %v3462_v15 = vld [vmem:[%s3251_s12 + $0x48] sm:$0xff]  ;;  %v3472_v20 = vld [vmem:[%s3251_s12 + $0x50] sm:$0xff]  ;;  %v2881_v21 = vpack.c.bf16 %v2207_v5, %v2206_v4 }
  0x22   : > { %v2190_v22 = vld [vmem:[%s4260_s3 + $0x320] sm:$0xff]  ;;  %v2209_v29 = vld [vmem:[%s4260_s3 + $0x3b8] sm:$0xff]  ;;  %v3493_v30 = vsel %vm455_vm0, %v471_v56, %v473_v9  ;;  %v477_v32 = vrot.slane %v3462_v15, 7  ;;  %v2144_v58 = vld [vmem:[%s4260_s3 + $0x1b0] sm:$0xff]  ;;  %v3503_v34 = vsel %vm455_vm0, %v473_v9, %v475_v59  ;;  %v479_v37 = vrot.slane %v3472_v20, 7 }
  0x23   : > { %2772 = vmatpush3.bf16.msra.mxu0 %v2771_v12  ;;  %2804 = vmatpush3.bf16.msra.mxu1 %v2801_v7  ;;  %v2815_v7 = vpack.c.bf16 %v2141_v50, %v2140_v47  ;;  %v3458_v12 = vsel %vm455_vm0, %v469_v46, %v471_v56  ;;  %v2145_v33 = vld [vmem:[%s4260_s3 + $0x1b8] sm:$0xff]  ;;  %v3516_v43 = vld [vmem:[%s3251_s12 + $0x60] sm:$0xff]  ;;  %v2192_v46 = vld [vmem:[%s4260_s3 + $0x330] sm:$0xff]  ;;  %v3533_v56 = vrot.slane %v3098_v48, 1 }
  0x24   : > { %2774 = vmatprep.subr.bf16.mxu0 %v2773_v13  ;;  %2806 = vmatprep.subr.bf16.mxu1 %v2805_v17  ;;  %v2817_v13 = vpack.c.bf16 %v2159_v62, %v2158_v61  ;;  %v3507_v38 = vld [vmem:[%s3251_s12 + $0x58] sm:$0xff]  ;;  %v2210_v50 = vld [vmem:[%s4260_s3 + $0x3c0] sm:$0xff]  ;;  %v3537_v61 = vsel %vm455_vm0, %v475_v59, %v477_v32  ;;  %v2823_v62 = vpack.c.bf16 %v2145_v33, %v2144_v58  ;;  %v483_v9 = vrot.slane %v3516_v43, 7 }
  0x25   : > { %v2193_v47 = vld [vmem:[%s4260_s3 + $0x338] sm:$0xff]  ;;  %v2146_v1 = vld [vmem:[%s4260_s3 + $0x1c0] sm:$0xff]  ;;  %v3547_v4 = vsel %vm455_vm0, %v477_v32, %v479_v37 }
  0x26   : > { %v2149_v32 = vld [vmem:[%s4260_s3 + $0x1d8] sm:$0xff]  ;;  %v2166_v33 = vld [vmem:[%s4260_s3 + $0x260] sm:$0xff] }
  0x27   : > { %2776 = vmatpush3.bf16.msra.mxu0 %v2775_v24  ;;  %2808 = vmatpush3.bf16.msra.mxu1 %v2805_v17  ;;  %v2160_v17 = vld [vmem:[%s4260_s3 + $0x230] sm:$0xff]  ;;  %v2191_v24 = vld [vmem:[%s4260_s3 + $0x328] sm:$0xff] }
  0x28   : > { %2874 = vmatprep.subr.bf16.mxu0 %v2873_v28  ;;  %2810 = vmatprep.subr.bf16.mxu1 %v2809_v31  ;;  %v2208_v28 = vld [vmem:[%s4260_s3 + $0x3b0] sm:$0xff]  ;;  %v2819_v31 = vpack.c.bf16 %v2143_v11, %v2142_v10  ;;  %v2821_v36 = vpack.c.bf16 %v2161_v19, %v2160_v17  ;;  %v2883_v42 = vpack.c.bf16 %v2191_v24, %v2190_v22  ;;  %v2165_v11 = vld [vmem:[%s4260_s3 + $0x258] sm:$0xff]  ;;  %v2194_v17 = vld [vmem:[%s4260_s3 + $0x340] sm:$0xff] }
  0x29   : > { %v2164_v10 = vld [vmem:[%s4260_s3 + $0x250] sm:$0xff]  ;;  %v2195_v19 = vld [vmem:[%s4260_s3 + $0x348] sm:$0xff]  ;;  %v2213_v22 = vld [vmem:[%s4260_s3 + $0x3d8] sm:$0xff] }
  0x2a   : > { %630 = vmatmul.mubr.f32.vlgmr.msra.gmra.mrb[0].mxu0 %v514_v40  ;;  %2610 = vmatmul.mubr.f32.vlgmr.msra.gmra.mrb[0].mxu1 %v3399_v44  ;;  %v2162_v40 = vld [vmem:[%s4260_s3 + $0x240] sm:$0xff] }
  0x2b   : > { %2876 = vmatpush3.bf16.msra.mxu0 %v2875_v41  ;;  %2812 = vmatpush3.bf16.msra.mxu1 %v2811_v45  ;;  %v2163_v41 = vld [vmem:[%s4260_s3 + $0x248] sm:$0xff]  ;;  %v2885_v45 = vpack.c.bf16 %v2209_v29, %v2208_v28  ;;  %v2829_v29 = vpack.c.bf16 %v2165_v11, %v2164_v10  ;;  %v2217_v11 = vld [vmem:[%s4260_s3 + $0x3f8] sm:$0xff] }
  0x2c   : > { %634 = vmatprep.mubr.f32.mxu0 %v3410_v54  ;;  %2612 = vmatprep.mubr.f32.mxu1 %v3423_v63  ;;  %v2825_v5 = vpack.c.bf16 %v2163_v41, %v2162_v40  ;;  %v2196_v41 = vld [vmem:[%s4260_s3 + $0x350] sm:$0xff]  ;;  %v2199_v10 = vld [vmem:[%s4260_s3 + $0x368] sm:$0xff] }
  0x2d   : > { %2814 = vmatprep.subr.bf16.mxu1 %v2813_v55  ;;  %2878 = vmatprep.subr.bf16.mxu0 %v2877_v0  ;;  %v2211_v55 = vld [vmem:[%s4260_s3 + $0x3c8] sm:$0xff]  ;;  %v481_v0 = vrot.slane %v3507_v38, 7 }
  0x2e   : > { %635 = vmatmul.mubr.f32.gmra.mrb[2].mxu0 %v3266_v49  ;;  %2613 = vmatmul.mubr.f32.gmra.mrb[2].mxu1 %v3443_v6  ;;  %v2889_v59 = vpack.c.bf16 %v2211_v55, %v2210_v50 }
  0x2f   : > { %639 = vmatprep.mubr.f32.mxu0 %v3447_v8  ;;  %2816 = vmatpush3.bf16.msra.mxu1 %v2815_v7  ;;  %v2147_v7 = vld [vmem:[%s4260_s3 + $0x1c8] sm:$0xff]  ;;  %v3584_v24 = vsel %vm455_vm0, %v479_v37, %v481_v0  ;;  %v3587_v28 = vsel %vm455_vm0, %v481_v0, %v483_v9 }
  0x30   : > { %2615 = vmatprep.mubr.f32.mxu1 %v3458_v12  ;;  %2818 = vmatprep.subr.bf16.mxu1 %v2817_v13  ;;  %v2887_v13 = vpack.c.bf16 %v2193_v47, %v2192_v46  ;;  %v2167_v37 = vld [vmem:[%s4260_s3 + $0x268] sm:$0xff]  ;;  %v3620_v46 = vsel %vm455_vm0, %v483_v9, %v3356_v25  ;;  %v2198_v9 = vld [vmem:[%s4260_s3 + $0x360] sm:$0xff] }
  0x31   : > { %2880 = vmatpush3.bf16.msra.mxu0 %v2879_v14  ;;  %v3561_v14 = vld [vmem:[%s3251_s12 + $0x70] sm:$0xff]  ;;  %v2833_v55 = vpack.c.bf16 %v2167_v37, %v2166_v33  ;;  %v2151_v0 = vld [vmem:[%s4260_s3 + $0x1e8] sm:$0xff] }
  0x32   : > { %640 = vmatmul.mubr.f32.gmra.mrb[4].mxu0 %v465_v27  ;;  %2882 = vmatprep.subr.bf16.mxu0 %v2881_v21  ;;  %v3572_v21 = vsel %vm1226_vm1, %v3533_v56, %v3544_v2  ;;  %v2827_v27 = vpack.c.bf16 %v2147_v7, %v2146_v1  ;;  %v486_v58 = vrot.slane %v3561_v14, 7  ;;  %v2168_v1 = vld [vmem:[%s4260_s3 + $0x270] sm:$0xff]  ;;  %v2219_v33 = vld [vmem:[%s4260_s3 + $0x408] sm:$0xff] }
  0x33   : > { %2616 = vmatmul.mubr.f32.gmra.mrb[4].mxu1 %v3493_v30  ;;  %644 = vmatprep.mubr.f32.mxu0 %v3399_v44 }
  0x34   : > { %2820 = vmatpush3.bf16.msra.mxu1 %v2819_v31  ;;  %2618 = vmatprep.mubr.f32.mxu1 %v3503_v34  ;;  %v2148_v31 = vld [vmem:[%s4260_s3 + $0x1d0] sm:$0xff]  ;;  %v3624_v50 = vsel %vm455_vm0, %v3356_v25, %v486_v58  ;;  %v2169_v25 = vld [vmem:[%s4260_s3 + $0x278] sm:$0xff] }
  0x35   : > { %2822 = vmatprep.subr.bf16.mxu1 %v2821_v36  ;;  %2884 = vmatpush3.bf16.msra.mxu0 %v2883_v42  ;;  %v2891_v36 = vpack.c.bf16 %v2195_v19, %v2194_v17  ;;  %v2197_v42 = vld [vmem:[%s4260_s3 + $0x358] sm:$0xff]  ;;  %v2831_v47 = vpack.c.bf16 %v2149_v32, %v2148_v31  ;;  %v490_v17 = vsel %vm455_vm0, %v3284_v57, %v3266_v49  ;;  %v2200_v32 = vld [vmem:[%s4260_s3 + $0x370] sm:$0xff] }
  0x36   : > { %645 = vmatmul.mubr.f32.gmra.mrb[6].mxu0 %v3410_v54  ;;  %2886 = vmatprep.subr.bf16.mxu0 %v2885_v45  ;;  %v2212_v54 = vld [vmem:[%s4260_s3 + $0x3d0] sm:$0xff]  ;;  %v2215_v45 = vld [vmem:[%s4260_s3 + $0x3e8] sm:$0xff]  ;;  %v2837_v19 = vpack.c.bf16 %v2169_v25, %v2168_v1 }
  0x37   : > { %2619 = vmatmul.mubr.f32.gmra.mrb[6].mxu1 %v3537_v61  ;;  %649 = vmatprep.mubr.f32.mxu0 %v3423_v63  ;;  %v2893_v40 = vpack.c.bf16 %v2213_v22, %v2212_v54  ;;  %v2152_v54 = vld [vmem:[%s4260_s3 + $0x1f0] sm:$0xff]  ;;  %v2153_v22 = vld [vmem:[%s4260_s3 + $0x1f8] sm:$0xff] }
  0x38   : > { %2824 = vmatpush3.bf16.msra.mxu1 %v2823_v62  ;;  %2621 = vmatprep.mubr.f32.mxu1 %v3547_v4  ;;  %v2150_v62 = vld [vmem:[%s4260_s3 + $0x1e0] sm:$0xff] }
  0x39   : > { %2826 = vmatprep.subr.bf16.mxu1 %v2825_v5  ;;  %2888 = vmatpush3.bf16.msra.mxu0 %v2887_v13  ;;  %v2895_v5 = vpack.c.bf16 %v2197_v42, %v2196_v41  ;;  %v3656_v13 = vsel %vm455_vm0, %v486_v58, %v3284_v57  ;;  %v2171_v57 = vld [vmem:[%s4260_s3 + $0x288] sm:$0xff]  ;;  %v2201_v58 = vld [vmem:[%s4260_s3 + $0x378] sm:$0xff]  ;;  %v2172_v41 = vld [vmem:[%s4260_s3 + $0x290] sm:$0xff] }
  0x3a   : > { %650 = vmatmul.mubr.f32.gmra.mrb[8].mxu0 %v3447_v8  ;;  %2890 = vmatprep.subr.bf16.mxu0 %v2889_v59  ;;  %v2214_v8 = vld [vmem:[%s4260_s3 + $0x3e0] sm:$0xff]  ;;  %v2835_v59 = vpack.c.bf16 %v2151_v0, %v2150_v62  ;;  %v2173_v42 = vld [vmem:[%s4260_s3 + $0x298] sm:$0xff]  ;;  %v2179_v0 = vld [vmem:[%s4260_s3 + $0x2c8] sm:$0xff] }
  0x3b   : > { %2622 = vmatmul.mubr.f32.gmra.mrb[8].mxu1 %v3584_v24  ;;  %654 = vmatprep.mubr.f32.mxu0 %v3443_v6  ;;  %v2897_v7 = vpack.c.bf16 %v2215_v45, %v2214_v8  ;;  %v2174_v45 = vld [vmem:[%s4260_s3 + $0x2a0] sm:$0xff] }
  0x3c   : > { %2828 = vmatpush3.bf16.msra.mxu1 %v2827_v27  ;;  %2624 = vmatprep.mubr.f32.mxu1 %v3587_v28  ;;  %v2170_v27 = vld [vmem:[%s4260_s3 + $0x280] sm:$0xff] }
  0x3d   : > { %2830 = vmatprep.subr.bf16.mxu1 %v2829_v29  ;;  %2892 = vmatpush3.bf16.msra.mxu0 %v2891_v36  ;;  %v2899_v29 = vpack.c.bf16 %v2199_v10, %v2198_v9  ;;  %v2839_v36 = vpack.c.bf16 %v2153_v22, %v2152_v54  ;;  %v2841_v37 = vpack.c.bf16 %v2171_v57, %v2170_v27  ;;  %v2185_v10 = vld [vmem:[%s4260_s3 + $0x2f8] sm:$0xff]  ;;  %v1238_v22 = vrot.slane %v3359_v26, 1 }
  0x3e   : > { %655 = vmatmul.mubr.f32.gmra.mrb[10].mxu0 %v3399_v44  ;;  %2894 = vmatprep.subr.bf16.mxu0 %v2893_v40  ;;  %v2216_v44 = vld [vmem:[%s4260_s3 + $0x3f0] sm:$0xff]  ;;  %v2903_v40 = vpack.c.bf16 %v2201_v58, %v2200_v32  ;;  %v2225_v57 = vld [vmem:[%s4260_s3 + $0x438] sm:$0xff]  ;;  %v2226_v58 = vld [vmem:[%s4260_s3 + $0x440] sm:$0xff] }
  0x3f   : > { %2625 = vmatmul.mubr.f32.gmra.mrb[10].mxu1 %v3620_v46  ;;  %659 = vmatprep.mubr.f32.mxu0 %v3458_v12  ;;  %v2901_v31 = vpack.c.bf16 %v2217_v11, %v2216_v44  ;;  %v3762_v44 = vrot.slane %v3269_v51, 1  ;;  %v1231_v11 = vrot.slane %v3353_v23, 1 }
  0x40   : > { %2832 = vmatpush3.bf16.msra.mxu1 %v2831_v47  ;;  %2627 = vmatprep.mubr.f32.mxu1 %v3624_v50  ;;  %v2175_v47 = vld [vmem:[%s4260_s3 + $0x2a8] sm:$0xff] }
  0x41   : > { %2834 = vmatprep.subr.bf16.mxu1 %v2833_v55  ;;  %2896 = vmatpush3.bf16.msra.mxu0 %v2895_v5  ;;  %v2177_v55 = vld [vmem:[%s4260_s3 + $0x2b8] sm:$0xff] }
  0x42   : > { %660 = vmatmul.mubr.f32.gmra.mrb[12].mxu0 %v3423_v63  ;;  %2898 = vmatprep.subr.bf16.mxu0 %v2897_v7  ;;  %v2218_v63 = vld [vmem:[%s4260_s3 + $0x400] sm:$0xff]  ;;  %v2181_v5 = vld [vmem:[%s4260_s3 + $0x2d8] sm:$0xff]  ;;  %v2183_v7 = vld [vmem:[%s4260_s3 + $0x2e8] sm:$0xff] }
  0x43   : > { %2628 = vmatmul.mubr.f32.gmra.mrb[12].mxu1 %v3656_v13  ;;  %664 = vmatprep.mubr.f32.mxu0 %v3493_v30  ;;  %v3695_v8 = vpack.c.bf16 %v2219_v33, %v2218_v63  ;;  %v2227_v63 = vld [vmem:[%s4260_s3 + $0x448] sm:$0xff] }
  0x44   : > { %2836 = vmatpush3.bf16.msra.mxu1 %v2835_v59  ;;  %2630 = vmatprep.mubr.f32.mxu1 %v490_v17  ;;  %v2222_v59 = vld [vmem:[%s4260_s3 + $0x420] sm:$0xff]  ;;  %v2223_v17 = vld [vmem:[%s4260_s3 + $0x428] sm:$0xff] }
  0x45   : > { %2838 = vmatprep.subr.bf16.mxu1 %v2837_v19  ;;  %2900 = vmatpush3.bf16.msra.mxu0 %v2899_v29  ;;  %v1236_v19 = vsel %vm1226_vm1, %v3533_v56, %v3762_v44  ;;  %v3805_v27 = vpack.c.bf16 %v2223_v17, %v2222_v59  ;;  %v2224_v29 = vld [vmem:[%s4260_s3 + $0x430] sm:$0xff] }
  0x46   : > { %665 = vmatmul.mubr.f32.gmra.mrb[14].mxu0 %v3443_v6  ;;  %2902 = vmatprep.subr.bf16.mxu0 %v2901_v31  ;;  %v2845_v6 = vpack.c.bf16 %v2173_v42, %v2172_v41  ;;  %v1240_v31 = vrot.slane %v3376_v35, 1  ;;  %v3822_v32 = vpack.c.bf16 %v2225_v57, %v2224_v29  ;;  %v2229_v41 = vld [vmem:[%s4260_s3 + $0x458] sm:$0xff]  ;;  %v3978_v57 = vld [vmem:[%s4261_s4] ss:$0 sm:$0xff] }
  0x47   : > { %2631 = vmatmul.mubr.f32.gmra.mrb[14].mxu1 %v3266_v49  ;;  %669 = vmatprep.mubr.f32.mxu0 %v3503_v34  ;;  %v2849_v49 = vpack.c.bf16 %v2175_v47, %v2174_v45  ;;  %v2230_v47 = vld [vmem:[%s4260_s3 + $0x460] sm:$0xff] }
  0x48   : > { %2840 = vmatpush3.bf16.msra.mxu1 %v2839_v36  ;;  %984 = vmatprep.mubr.f32.mxu1 %v3269_v51  ;;  %v3834_v33 = vsel %vm1226_vm1, %v1238_v22, %v1240_v31  ;;  %v1242_v36 = vrot.slane %v3386_v39, 1 }
  0x49   : > { %2842 = vmatprep.subr.bf16.mxu1 %v2841_v37  ;;  %2904 = vmatpush3.bf16.msra.mxu0 %v2903_v40  ;;  %v2228_v40 = vld [vmem:[%s4260_s3 + $0x450] sm:$0xff] }
  0x4a   : > { %670 = vmatmul.mubr.f32.gmra.mrb[16].mxu0 %v3458_v12  ;;  %2906 = vmatprep.subr.bf16.mxu0 %v3695_v8  ;;  %v2176_v12 = vld [vmem:[%s4260_s3 + $0x2b0] sm:$0xff]  ;;  %v3851_v42 = vsel %vm1226_vm1, %v1240_v31, %v1242_v36  ;;  %v3856_v45 = vpack.c.bf16 %v2229_v41, %v2228_v40 }
  0x4b   : > { %985 = vmatmul.mubr.f32.vlgmr.msra.gmra.mrb[16].mxu1 %v3098_v48  ;;  %674 = vmatprep.mubr.f32.mxu0 %v3537_v61  ;;  %v2853_v62 = vpack.c.bf16 %v2177_v55, %v2176_v12  ;;  %v1246_v55 = vrot.slane %v3432_v3, 1 }
  0x4c   : > { %2844 = vmatpush3.bf16.msra.mxu1 %v2841_v37  ;;  %989 = vmatprep.mubr.f32.mxu1 %v3353_v23  ;;  %v3839_v37 = vpack.c.bf16 %v2227_v63, %v2226_v58 }
  0x4d   : > { %2846 = vmatprep.subr.bf16.mxu1 %v2845_v6 }
  0x4e   : > { %675 = vmatmul.mubr.f32.gmra.mrb[18].mxu0 %v3493_v30  ;;  %v2178_v30 = vld [vmem:[%s4260_s3 + $0x2c0] sm:$0xff] }
  0x4f   : > { %990 = vmatmul.mubr.f32.gmra.mrb[18].mxu1 %v3098_v48  ;;  %679 = vmatprep.mubr.f32.mxu0 %v3547_v4  ;;  %v2857_v1 = vpack.c.bf16 %v2179_v0, %v2178_v30  ;;  %v2232_v30 = vld [vmem:[%s4260_s3 + $0x470] sm:$0xff]  ;;  %v2233_v0 = vld [vmem:[%s4260_s3 + $0x478] sm:$0xff] }
  0x50   : > { %994 = vmatprep.mubr.f32.mxu1 %v3275_v53  ;;  %2848 = vmatpush3.bf16.msra.mxu1 %v2845_v6  ;;  %v1244_v6 = vrot.slane %v3414_v60, 1 }
  0x51   : > { %2850 = vmatprep.subr.bf16.mxu1 %v2849_v49 }
  0x52   : > { %680 = vmatmul.mubr.f32.gmra.mrb[20].mxu0 %v3503_v34  ;;  %v2180_v34 = vld [vmem:[%s4260_s3 + $0x2d0] sm:$0xff]  ;;  %v3869_v12 = vsel %vm1226_vm1, %v1242_v36, %v1244_v6 }
  0x53   : > { %995 = vmatmul.mubr.f32.gmra.mrb[20].mxu1 %v3269_v51  ;;  %684 = vmatprep.mubr.f32.mxu0 %v3584_v24  ;;  %v2861_v25 = vpack.c.bf16 %v2181_v5, %v2180_v34  ;;  %v2220_v51 = vld [vmem:[%s4260_s3 + $0x410] sm:$0xff]  ;;  %v1248_v34 = vrot.slane %v3462_v15, 1  ;;  %v3892_v5 = vpack.c.bf16 %v2233_v0, %v2232_v30 }
  0x54   : > { %999 = vmatprep.mubr.f32.mxu1 %v3338_v18  ;;  %2852 = vmatpush3.bf16.msra.mxu1 %v2849_v49  ;;  %v2231_v49 = vld [vmem:[%s4260_s3 + $0x468] sm:$0xff] }
  0x55   : > { %2854 = vmatprep.subr.bf16.mxu1 %v2853_v62 }
  0x56   : > { %685 = vmatmul.mubr.f32.gmra.mrb[22].mxu0 %v3537_v61  ;;  %v2182_v61 = vld [vmem:[%s4260_s3 + $0x2e0] sm:$0xff] }
  0x57   : > { %1000 = vmatmul.mubr.f32.gmra.mrb[22].mxu1 %v3353_v23  ;;  %689 = vmatprep.mubr.f32.mxu0 %v3587_v28  ;;  %v2865_v9 = vpack.c.bf16 %v2183_v7, %v2182_v61  ;;  %v2221_v23 = vld [vmem:[%s4260_s3 + $0x418] sm:$0xff]  ;;  %v1250_v61 = vrot.slane %v3472_v20, 1 }
  0x58   : > { %1004 = vmatprep.mubr.f32.mxu1 %v3359_v26  ;;  %2856 = vmatpush3.bf16.msra.mxu1 %v2853_v62  ;;  %v3874_v62 = vpack.c.bf16 %v2231_v49, %v2230_v47 }
  0x59   : > { %2858 = vmatprep.subr.bf16.mxu1 %v2857_v1  ;;  %v3909_v7 = vsel %vm1226_vm1, %v1248_v34, %v1250_v61 }
  0x5a   : > { %690 = vmatmul.mubr.f32.gmra.mrb[24].mxu0 %v3547_v4  ;;  %v2184_v4 = vld [vmem:[%s4260_s3 + $0x2f0] sm:$0xff] }
  0x5b   : > { %1005 = vmatmul.mubr.f32.gmra.mrb[24].mxu1 %v3275_v53  ;;  %694 = vmatprep.mubr.f32.mxu0 %v3620_v46 }
  0x5c   : > { %1009 = vmatprep.mubr.f32.mxu1 %v3376_v35  ;;  %2860 = vmatpush3.bf16.msra.mxu1 %v2857_v1  ;;  %v3887_v1 = vsel %vm1226_vm1, %v1244_v6, %v1246_v55 }
  0x5d   : > { %2862 = vmatprep.subr.bf16.mxu1 %v2861_v25 }
  0x5e   : > { %695 = vmatmul.mubr.f32.gmra.mrb[26].mxu0 %v3584_v24  ;;  %v2869_v24 = vpack.c.bf16 %v2185_v10, %v2184_v4 }
  0x5f   : > { %1010 = vmatmul.mubr.f32.gmra.mrb[26].mxu1 %v3338_v18  ;;  %699 = vmatprep.mubr.f32.mxu0 %v3624_v50  ;;  %v1232_v50 = vsel %vm1226_vm1, %v3762_v44, %v1231_v11 }
  0x60   : > { %1014 = vmatprep.mubr.f32.mxu1 %v3386_v39  ;;  %2864 = vmatpush3.bf16.msra.mxu1 %v2861_v25  ;;  %v3899_v25 = vsel %vm1226_vm1, %v1246_v55, %v1248_v34 }
  0x61   : > { %2866 = vmatprep.subr.bf16.mxu1 %v2865_v9 }
  0x62   : > { %700 = vmatmul.mubr.f32.gmra.mrb[28].mxu0 %v3587_v28  ;;  %v1234_v28 = vrot.slane %v3338_v18, 1 }
  0x63   : > { %1015 = vmatmul.mubr.f32.gmra.mrb[28].mxu1 %v3359_v26  ;;  %704 = vmatprep.mubr.f32.mxu0 %v3656_v13  ;;  %v1237_v13 = vsel %vm1226_vm1, %v1231_v11, %v3544_v2 }
  0x64   : > { %1019 = vmatprep.mubr.f32.mxu1 %v3414_v60  ;;  %2868 = vmatpush3.bf16.msra.mxu1 %v2865_v9  ;;  %v3801_v54 = vsel %vm1226_vm1, %v3544_v2, %v1234_v28  ;;  %v3818_v2 = vsel %vm1226_vm1, %v1234_v28, %v1238_v22  ;;  %v1252_v9 = vrot.slane %v3507_v38, 1 }
  0x65   : > { %2870 = vmatprep.subr.bf16.mxu1 %v2869_v24 }
  0x66   : > { %705 = vmatmul.mubr.f32.gmra.mrb[30].mxu0 %v3620_v46  ;;  %v3783_v46 = vpack.c.bf16 %v2221_v23, %v2220_v51  ;;  %v1253_v4 = vsel %vm1226_vm1, %v1250_v61, %v1252_v9 }
  0x67   : > { %1020 = vmatmul.mubr.f32.gmra.mrb[30].mxu1 %v3376_v35  ;;  %1407 = vmatprep.mubr.f32.mxu0 %v1232_v50 }
  0x68   : > { %1024 = vmatprep.mubr.f32.mxu1 %v3432_v3  ;;  %2872 = vmatpush3.bf16.msra.mxu1 %v2869_v24 }
  0x69   : > { %2937 = vmatprep.subr.bf16.mxu1 %v3695_v8 }
  0x6a   : > { %1408 = vmatmul.mubr.f32.vlgmr.msra.gmra.mrb[32].mxu0 %v3533_v56 }
  0x6b   : > { %1025 = vmatmul.mubr.f32.gmra.mrb[32].mxu1 %v3386_v39  ;;  %2908 = vmatpush3.bf16.msra.mxu0 %v3695_v8 }
  0x6c   : > { %1029 = vmatprep.mubr.f32.mxu1 %v3462_v15  ;;  %1412 = vmatprep.mubr.f32.mxu0 %v1237_v13 }
  0x6d   : > { %2910 = vmatprep.subr.bf16.mxu0 %v3783_v46 }
  0x6e   : > { %1413 = vmatmul.mubr.f32.gmra.mrb[34].mxu0 %v1236_v19 }
  0x6f   : > { %1030 = vmatmul.mubr.f32.gmra.mrb[34].mxu1 %v3414_v60  ;;  %1417 = vmatprep.mubr.f32.mxu0 %v3801_v54 }
  0x70   : > { %1034 = vmatprep.mubr.f32.mxu1 %v3472_v20  ;;  %2912 = vmatpush3.bf16.msra.mxu0 %v3783_v46 }
  0x71   : > { %2914 = vmatprep.subr.bf16.mxu0 %v3805_v27 }
  0x72   : > { %1418 = vmatmul.mubr.f32.gmra.mrb[36].mxu0 %v1232_v50 }
  0x73   : > { %1035 = vmatmul.mubr.f32.gmra.mrb[36].mxu1 %v3432_v3  ;;  %1422 = vmatprep.mubr.f32.mxu0 %v3818_v2 }
  0x74   : > { %1039 = vmatprep.mubr.f32.mxu1 %v3507_v38  ;;  %2916 = vmatpush3.bf16.msra.mxu0 %v3805_v27 }
  0x75   : > { %2918 = vmatprep.subr.bf16.mxu0 %v3822_v32 }
  0x76   : > { %1423 = vmatmul.mubr.f32.gmra.mrb[38].mxu0 %v1237_v13 }
  0x77   : > { %1040 = vmatmul.mubr.f32.gmra.mrb[38].mxu1 %v3462_v15  ;;  %1427 = vmatprep.mubr.f32.mxu0 %v3834_v33 }
  0x78   : > { %1044 = vmatprep.mubr.f32.mxu1 %v3516_v43  ;;  %2920 = vmatpush3.bf16.msra.mxu0 %v3822_v32 }
  0x79   : > { %2922 = vmatprep.subr.bf16.mxu0 %v3839_v37 }
  0x7a   : > { %1428 = vmatmul.mubr.f32.gmra.mrb[40].mxu0 %v3801_v54 }
  0x7b   : > { %1045 = vmatmul.mubr.f32.gmra.mrb[40].mxu1 %v3472_v20  ;;  %1432 = vmatprep.mubr.f32.mxu0 %v3851_v42 }
  0x7c   : > { %1049 = vmatprep.mubr.f32.mxu1 %v3335_v16  ;;  %2924 = vmatpush3.bf16.msra.mxu0 %v3839_v37 }
  0x7d   : > { %2926 = vmatprep.subr.bf16.mxu0 %v3856_v45 }
  0x7e   : > { %1433 = vmatmul.mubr.f32.gmra.mrb[42].mxu0 %v3818_v2 }
  0x7f   : > { %1050 = vmatmul.mubr.f32.gmra.mrb[42].mxu1 %v3507_v38  ;;  %1437 = vmatprep.mubr.f32.mxu0 %v3869_v12 }
  0x80   : > { %1054 = vmatprep.mubr.f32.mxu1 %v3561_v14  ;;  %2928 = vmatpush3.bf16.msra.mxu0 %v3856_v45 }
  0x81   : > { %2930 = vmatprep.subr.bf16.mxu0 %v3874_v62 }
  0x82   : > { %1438 = vmatmul.mubr.f32.gmra.mrb[44].mxu0 %v3834_v33 }
  0x83   : > { %1055 = vmatmul.mubr.f32.gmra.mrb[44].mxu1 %v3516_v43  ;;  %1442 = vmatprep.mubr.f32.mxu0 %v3887_v1 }
  0x84   : > { %1059 = vmatprep.mubr.f32.mxu1 %v3272_v52  ;;  %2932 = vmatpush3.bf16.msra.mxu0 %v3874_v62 }
  0x85   : > { %2934 = vmatprep.subr.bf16.mxu0 %v3892_v5 }
  0x86   : > { %1443 = vmatmul.mubr.f32.gmra.mrb[46].mxu0 %v3851_v42 }
  0x87   : > { %1060 = vmatmul.mubr.f32.gmra.mrb[46].mxu1 %v3335_v16  ;;  %1447 = vmatprep.mubr.f32.mxu0 %v3899_v25 }
  0x88   : > { %2665 = vmatprep.mubr.f32.mxu1 %v3275_v53  ;;  %2936 = vmatpush3.bf16.msra.mxu0 %v3892_v5  ;;  %v1254_v53 = vrot.slane %v3516_v43, 1 }
  0x8a   : > { %1448 = vmatmul.mubr.f32.gmra.mrb[48].mxu0 %v3869_v12 }
  0x8b   : > { %2666 = vmatmul.mubr.f32.vlgmr.msra.gmra.mrb[0].mxu1 %v3338_v18  ;;  %1452 = vmatprep.mubr.f32.mxu0 %v3909_v7  ;;  %v1255_v18 = vsel %vm1226_vm1, %v1252_v9, %v1254_v53 }
  0x8c   : > { %2945 = vmatpush3.bf16.msra.mxu1 %v3695_v8  ;;  %2668 = vmatprep.mubr.f32.mxu1 %v3359_v26  ;;  %v1256_v8 = vrot.slane %v3335_v16, 1 }
  0x8d   : > { %2938 = vmatprep.subr.bf16.mxu1 %v3783_v46 }
  0x8e   : > { %1453 = vmatmul.mubr.f32.gmra.mrb[50].mxu0 %v3887_v1  ;;  %v1257_v26 = vsel %vm1226_vm1, %v1254_v53, %v1256_v8 }
  0x8f   : > { %2669 = vmatmul.mubr.f32.gmra.mrb[2].mxu1 %v3376_v35  ;;  %1457 = vmatprep.mubr.f32.mxu0 %v1253_v4  ;;  %v1258_v35 = vrot.slane %v3561_v14, 1 }
  0x90   : > { %2946 = vmatpush3.bf16.msra.mxu1 %v3783_v46  ;;  %2671 = vmatprep.mubr.f32.mxu1 %v3386_v39 }
  0x91   : > { %2939 = vmatprep.subr.bf16.mxu1 %v3805_v27  ;;  %v1259_v39 = vsel %vm1226_vm1, %v1256_v8, %v1258_v35 }
  0x92   : > { %1458 = vmatmul.mubr.f32.gmra.mrb[52].mxu0 %v3899_v25 }
  0x93   : > { %2672 = vmatmul.mubr.f32.gmra.mrb[4].mxu1 %v3414_v60  ;;  %1462 = vmatprep.mubr.f32.mxu0 %v1255_v18  ;;  %v1260_v60 = vrot.slane %v3272_v52, 1 }
  0x94   : > { %2947 = vmatpush3.bf16.msra.mxu1 %v3805_v27  ;;  %2674 = vmatprep.mubr.f32.mxu1 %v3432_v3 }
  0x95   : > { %2940 = vmatprep.subr.bf16.mxu1 %v3822_v32  ;;  %v1261_v3 = vsel %vm1226_vm1, %v1258_v35, %v1260_v60 }
  0x96   : > { %1463 = vmatmul.mubr.f32.gmra.mrb[54].mxu0 %v3909_v7 }
  0x97   : > { %2675 = vmatmul.mubr.f32.gmra.mrb[6].mxu1 %v3462_v15  ;;  %1467 = vmatprep.mubr.f32.mxu0 %v1257_v26  ;;  %v1292_v15 = vsel %vm1226_vm1, %v1260_v60, %v3762_v44 }
  0x98   : > { %2948 = vmatpush3.bf16.msra.mxu1 %v3822_v32  ;;  %2677 = vmatprep.mubr.f32.mxu1 %v3472_v20  ;;  %v1291_v20 = vsel %vm1226_vm1, %v1256_v8, %v3533_v56 }
  0x99   : > { %2941 = vmatprep.subr.bf16.mxu1 %v3839_v37 }
  0x9a   : > { %1468 = vmatmul.mubr.f32.gmra.mrb[56].mxu0 %v1253_v4 }
  0x9b   : > { %2678 = vmatmul.mubr.f32.gmra.mrb[8].mxu1 %v3507_v38  ;;  %1472 = vmatprep.mubr.f32.mxu0 %v1259_v39 }
  0x9c   : > { %2949 = vmatpush3.bf16.msra.mxu1 %v3839_v37  ;;  %2680 = vmatprep.mubr.f32.mxu1 %v3516_v43 }
  0x9d   : > { %2942 = vmatprep.subr.bf16.mxu1 %v3856_v45 }
  0x9e   : > { %1473 = vmatmul.mubr.f32.gmra.mrb[58].mxu0 %v1255_v18 }
  0x9f   : > { %2681 = vmatmul.mubr.f32.gmra.mrb[10].mxu1 %v3335_v16  ;;  %1477 = vmatprep.mubr.f32.mxu0 %v1261_v3 }
  0xa0   : > { %2950 = vmatpush3.bf16.msra.mxu1 %v3856_v45  ;;  %2683 = vmatprep.mubr.f32.mxu1 %v3561_v14 }
  0xa1   : > { %2943 = vmatprep.subr.bf16.mxu1 %v3874_v62 }
  0xa2   : > { %1478 = vmatmul.mubr.f32.gmra.mrb[60].mxu0 %v1257_v26 }
  0xa3   : > { %2684 = vmatmul.mubr.f32.gmra.mrb[12].mxu1 %v3272_v52  ;;  %1482 = vmatprep.mubr.f32.mxu0 %v1292_v15 }
  0xa4   : > { %2951 = vmatpush3.bf16.msra.mxu1 %v3874_v62  ;;  %2686 = vmatprep.mubr.f32.mxu1 %v3098_v48 }
  0xa5   : > { %2944 = vmatprep.subr.bf16.mxu1 %v3892_v5 }
  0xa6   : > { %1483 = vmatmul.mubr.f32.gmra.mrb[62].mxu0 %v1291_v20 }
  0xa7   : > { %2687 = vmatmul.mubr.f32.gmra.mrb[14].mxu1 %v3098_v48  ;;  %2721 = vmatprep.mubr.f32.mxu0 %v3801_v54  ;;  %v1263_v48 = vsel %vm1226_vm1, %v1260_v60, %v3533_v56 }
  0xa8   : > { %2952 = vmatpush3.bf16.msra.mxu1 %v3892_v5  ;;  %2733 = vmatprep.mubr.f32.mxu1 %v1253_v4 }
  0xaa   : > { %2722 = vmatmul.mubr.f32.vlgmr.msra.gmra.mrb[64].mxu0 %v3818_v2 }
  0xab   : > { %2734 = vmatmul.mubr.f32.vlgmr.msra.gmra.mrb[8].mxu1 %v1255_v18  ;;  %2724 = vmatprep.mubr.f32.mxu0 %v3834_v33 }
  0xac   : > { %2736 = vmatprep.mubr.f32.mxu1 %v1257_v26 }
  0xae   : > { %2725 = vmatmul.mubr.f32.gmra.mrb[66].mxu0 %v3851_v42 }
  0xaf   : > { %2737 = vmatmul.mubr.f32.gmra.mrb[10].mxu1 %v1259_v39  ;;  %2727 = vmatprep.mubr.f32.mxu0 %v3869_v12 }
  0xb0   : > { %2739 = vmatprep.mubr.f32.mxu1 %v1261_v3 }
  0xb2   : > { %2728 = vmatmul.mubr.f32.gmra.mrb[68].mxu0 %v3887_v1 }
  0xb3   : > { %2740 = vmatmul.mubr.f32.gmra.mrb[12].mxu1 %v1263_v48  ;;  %2730 = vmatprep.mubr.f32.mxu0 %v3899_v25 }
  0xb4   : > { %2742 = vmatprep.mubr.f32.mxu1 %v3533_v56 }
  0xb6   : > { %2731 = vmatmul.mubr.f32.gmra.mrb[70].mxu0 %v3909_v7 }
  0xb7   : > { %2743 = vmatmul.mubr.f32.gmra.mrb[14].mxu1 %v3572_v21 }
  0xfd   : > { %v2273_v52 = vpop.f32.mrb[0].mxu0 }
  0xfe   : > { %v2274_v16 = vpop.f32.mrb[1].mxu0 }
  0xff   : > { %v2275_v38 = vadd.f32 %v2274_v16, %v2273_v52 }
 0x101   : > { %v2276_v43 = vpop.f32.mrb[2].mxu0  ;;  %v2958_v33 = vadd.f32 %v2275_v38, %v3978_v57 }
 0x102   : > { %v2277_v14 = vpop.f32.mrb[3].mxu0 }
 0x103   : > { %v2278_v10 = vadd.f32 %v2277_v14, %v2276_v43 }
 0x105   : > { %v2279_v44 = vpop.f32.mrb[4].mxu0  ;;  %v2953_v47 = vadd.f32 %v2278_v10, %v3978_v57 }
 0x106   : > { %v2280_v11 = vpop.f32.mrb[5].mxu0 }
 0x107   : > { %v2281_v24 = vadd.f32 %v2280_v11, %v2279_v44 }
 0x109   : > { %v2282_v50 = vpop.f32.mrb[6].mxu0  ;;  %v2968_v34 = vadd.f32 %v2281_v24, %v3978_v57 }
 0x10a   : > { %v2283_v51 = vpop.f32.mrb[7].mxu0 }
 0x10b   : > { %v2284_v23 = vadd.f32 %v2283_v51, %v2282_v50 }
 0x10d   : > { %v2285_v28 = vpop.f32.mrb[8].mxu0  ;;  %v2963_v18 = vadd.f32 %v2284_v23, %v3978_v57 }
 0x10e   : > { %v2286_v13 = vpop.f32.mrb[9].mxu0 }
 0x10f   : > { %v2287_v46 = vadd.f32 %v2286_v13, %v2285_v28 }
 0x111   : > { %v2288_v56 = vpop.f32.mrb[10].mxu0  ;;  %v2978_v20 = vadd.f32 %v2287_v46, %v3978_v57 }
 0x112   : > { %v2289_v59 = vpop.f32.mrb[11].mxu0 }
 0x113   : > { %v2290_v17 = vadd.f32 %v2289_v59, %v2288_v56 }
 0x115   : > { %v2291_v19 = vpop.f32.mrb[12].mxu0  ;;  %v2973_v44 = vadd.f32 %v2290_v17, %v3978_v57 }
 0x116   : > { %v2292_v21 = vpop.f32.mrb[13].mxu0 }
 0x117   : > { %v2293_v54 = vadd.f32 %v2292_v21, %v2291_v19 }
 0x119   : > { %v2294_v22 = vpop.f32.mrb[14].mxu0  ;;  %v2988_v46 = vadd.f32 %v2293_v54, %v3978_v57 }
 0x11a   : > { %v2295_v27 = vpop.f32.mrb[15].mxu0 }
 0x11b   : > { %v3973_v29 = vadd.f32 %v2295_v27, %v2294_v22 }
 0x11d   : > { %v2297_v2 = vpop.f32.mrb[16].mxu0 }
 0x11e   : > { %v2385_v31 = vpop.f32.mrb[16].mxu1  ;;  %v2298_v32 = vpop.f32.mrb[17].mxu0 }
 0x11f   : > { %v3980_v58 = vadd.f32 %v2298_v32, %v2297_v2  ;;  %v2386_v63 = vpop.f32.mrb[17].mxu1  ;;  %v2983_v2 = vadd.f32 %v3973_v29, %v3978_v57 }
 0x120   : > { %v2387_v36 = vadd.f32 %v2386_v63, %v2385_v31 }
 0x121   : > { %v2300_v37 = vpop.f32.mrb[18].mxu0 }
 0x122   : > { %v2388_v40 = vpop.f32.mrb[18].mxu1  ;;  %v2301_v41 = vpop.f32.mrb[19].mxu0  ;;  %v3983_v42 = vadd.f32 %v2958_v33, %v2387_v36 }
 0x123   : > { %v3985_v6 = vadd.f32 %v2301_v41, %v2300_v37  ;;  %v2389_v45 = vpop.f32.mrb[19].mxu1 }
 0x124   : > { %v2390_v49 = vadd.f32 %v2389_v45, %v2388_v40  ;;  %v2997_v40 = vadd.f32 %v3980_v58, %v3978_v57 }
 0x125   : > { %v2303_v12 = vpop.f32.mrb[20].mxu0 }
 0x126   : > { %v2391_v55 = vpop.f32.mrb[20].mxu1  ;;  %v2304_v62 = vpop.f32.mrb[21].mxu0  ;;  %v3988_v30 = vadd.f32 %v2953_v47, %v2390_v49 }
 0x127   : > { %v3990_v0 = vadd.f32 %v2304_v62, %v2303_v12  ;;  %v2392_v1 = vpop.f32.mrb[21].mxu1  ;;  %v2993_v62 = vadd.f32 %v3985_v6, %v3978_v57 }
 0x128   : > { %v2393_v5 = vadd.f32 %v2392_v1, %v2391_v55 }
 0x129   : > { %v2306_v25 = vpop.f32.mrb[22].mxu0  ;;  %v3005_v58 = vadd.f32 %v3990_v0, %v3978_v57 }
 0x12a   : > { %v2394_v61 = vpop.f32.mrb[22].mxu1  ;;  %v2307_v7 = vpop.f32.mrb[23].mxu0  ;;  %v3993_v9 = vadd.f32 %v2968_v34, %v2393_v5 }
 0x12b   : > { %v3995_v4 = vadd.f32 %v2307_v7, %v2306_v25  ;;  %v2395_v53 = vpop.f32.mrb[23].mxu1 }
 0x12c   : > { %v2396_v8 = vadd.f32 %v2395_v53, %v2394_v61 }
 0x12d   : > { %v2309_v26 = vpop.f32.mrb[24].mxu0 }
 0x12e   : > { %v2397_v35 = vpop.f32.mrb[24].mxu1  ;;  %v2310_v39 = vpop.f32.mrb[25].mxu0  ;;  %v3998_v60 = vadd.f32 %v2963_v18, %v2396_v8 }
 0x12f   : > { %v4000_v3 = vadd.f32 %v2310_v39, %v2309_v26  ;;  %v2398_v15 = vpop.f32.mrb[25].mxu1 }
 0x130   : > { %v2399_v48 = vadd.f32 %v2398_v15, %v2397_v35 }
 0x131   : > { %v2312_v52 = vpop.f32.mrb[26].mxu0  ;;  %v3013_v0 = vadd.f32 %v4000_v3, %v3978_v57 }
 0x132   : > { %v2400_v16 = vpop.f32.mrb[26].mxu1  ;;  %v2313_v38 = vpop.f32.mrb[27].mxu0  ;;  %v4003_v43 = vadd.f32 %v2978_v20, %v2399_v48  ;;  %v3001_v20 = vadd.f32 %v3995_v4, %v3978_v57 }
 0x133   : > { %v4005_v14 = vadd.f32 %v2313_v38, %v2312_v52  ;;  %v2401_v10 = vpop.f32.mrb[27].mxu1 }
 0x134   : > { %v2402_v11 = vadd.f32 %v2401_v10, %v2400_v16 }
 0x135   : > { %v2315_v24 = vpop.f32.mrb[28].mxu0  ;;  %v3009_v4 = vadd.f32 %v4005_v14, %v3978_v57 }
 0x136   : > { %v2403_v50 = vpop.f32.mrb[28].mxu1  ;;  %v2316_v51 = vpop.f32.mrb[29].mxu0  ;;  %v4008_v23 = vadd.f32 %v2973_v44, %v2402_v11 }
 0x137   : > { %v4010_v28 = vadd.f32 %v2316_v51, %v2315_v24  ;;  %v2404_v13 = vpop.f32.mrb[29].mxu1 }
 0x138   : > { %v2405_v56 = vadd.f32 %v2404_v13, %v2403_v50 }
 0x139   : > { %v2318_v59 = vpop.f32.mrb[30].mxu0  ;;  %v3021_v3 = vadd.f32 %v4010_v28, %v3978_v57 }
 0x13a   : > { %v2406_v19 = vpop.f32.mrb[30].mxu1  ;;  %v2319_v21 = vpop.f32.mrb[31].mxu0  ;;  %v4013_v22 = vadd.f32 %v2988_v46, %v2405_v56 }
 0x13b   : > { %v4015_v27 = vadd.f32 %v2319_v21, %v2318_v59  ;;  %v2407_v17 = vpop.f32.mrb[31].mxu1 }
 0x13c   : > { %v2408_v31 = vadd.f32 %v2407_v17, %v2406_v19 }
 0x13d   : > { %v2497_v32 = vpop.f32.mrb[32].mxu0  ;;  %v3017_v14 = vadd.f32 %v4015_v27, %v3978_v57 }
 0x13e   : > { %v2409_v63 = vpop.f32.mrb[32].mxu1  ;;  %v2498_v33 = vpop.f32.mrb[33].mxu0  ;;  %v4019_v36 = vadd.f32 %v2983_v2, %v2408_v31 }
 0x13f   : > { %v2410_v37 = vpop.f32.mrb[33].mxu1  ;;  %v4021_v54 = vadd.f32 %v2498_v33, %v2497_v32 }
 0x140   : > { %v2411_v41 = vadd.f32 %v2410_v37, %v2409_v63 }
 0x141   : > { %v2500_v45 = vpop.f32.mrb[34].mxu0 }
 0x142   : > { %v4025_v47 = vadd.f32 %v2997_v40, %v2411_v41  ;;  %v2412_v49 = vpop.f32.mrb[34].mxu1  ;;  %v2501_v12 = vpop.f32.mrb[35].mxu0 }
 0x143   : > { %v2413_v55 = vpop.f32.mrb[35].mxu1  ;;  %v2502_v29 = vadd.f32 %v2501_v12, %v2500_v45 }
 0x144   : > { %v2414_v1 = vadd.f32 %v2413_v55, %v2412_v49 }
 0x145   : > { %v2503_v34 = vpop.f32.mrb[36].mxu0 }
 0x146   : > { %v4029_v5 = vadd.f32 %v2993_v62, %v2414_v1  ;;  %v2415_v25 = vpop.f32.mrb[36].mxu1  ;;  %v2504_v61 = vpop.f32.mrb[37].mxu0 }
 0x147   : > { %v2416_v7 = vpop.f32.mrb[37].mxu1  ;;  %v4031_v53 = vadd.f32 %v2504_v61, %v2503_v34 }
 0x148   : > { %v2417_v18 = vadd.f32 %v2416_v7, %v2415_v25 }
 0x149   : > { %v2506_v8 = vpop.f32.mrb[38].mxu0 }
 0x14a   : > { %v4035_v26 = vadd.f32 %v3005_v58, %v2417_v18  ;;  %v2418_v35 = vpop.f32.mrb[38].mxu1  ;;  %v2507_v39 = vpop.f32.mrb[39].mxu0 }
 0x14b   : > { %v2419_v15 = vpop.f32.mrb[39].mxu1  ;;  %v2508_v6 = vadd.f32 %v2507_v39, %v2506_v8 }
 0x14c   : > { %v2420_v48 = vadd.f32 %v2419_v15, %v2418_v35 }
 0x14d   : > { %v2509_v52 = vpop.f32.mrb[40].mxu0 }
 0x14e   : > { %v4039_v16 = vadd.f32 %v3001_v20, %v2420_v48  ;;  %v2421_v38 = vpop.f32.mrb[40].mxu1  ;;  %v2510_v10 = vpop.f32.mrb[41].mxu0 }
 0x14f   : > { %v2422_v44 = vpop.f32.mrb[41].mxu1  ;;  %v2511_v11 = vadd.f32 %v2510_v10, %v2509_v52 }
 0x150   : > { %v2423_v24 = vadd.f32 %v2422_v44, %v2421_v38 }
 0x151   : > { %v2512_v50 = vpop.f32.mrb[42].mxu0 }
 0x152   : > { %v4043_v51 = vadd.f32 %v3013_v0, %v2423_v24  ;;  %v2424_v13 = vpop.f32.mrb[42].mxu1  ;;  %v2513_v46 = vpop.f32.mrb[43].mxu0 }
 0x153   : > { %v2425_v56 = vpop.f32.mrb[43].mxu1  ;;  %v2514_v59 = vadd.f32 %v2513_v46, %v2512_v50 }
 0x154   : > { %v2426_v19 = vadd.f32 %v2425_v56, %v2424_v13 }
 0x155   : > { %v2515_v21 = vpop.f32.mrb[44].mxu0 }
 0x156   : > { %v4047_v17 = vadd.f32 %v3009_v4, %v2426_v19  ;;  %v2427_v2 = vpop.f32.mrb[44].mxu1  ;;  %v2516_v31 = vpop.f32.mrb[45].mxu0  ;;  %v1665_v4 = vlaneseq }
 0x157   : > { %v2428_v32 = vpop.f32.mrb[45].mxu1  ;;  %v2517_v63 = vadd.f32 %v2516_v31, %v2515_v21 }
 0x158   : > { %v2429_v33 = vadd.f32 %v2428_v32, %v2427_v2  ;;  %v4095_v31 = vshrl.u32 %v1665_v4, 7 }
 0x159   : > { %v2518_v37 = vpop.f32.mrb[46].mxu0 }
 0x15a   : > { %v4051_v40 = vadd.f32 %v3021_v3, %v2429_v33  ;;  %v2430_v41 = vpop.f32.mrb[46].mxu1  ;;  %v2519_v45 = vpop.f32.mrb[47].mxu0  ;;  %v1675_v33 = vadd.s32 72, %v4095_v31 }
 0x15b   : > { %v2431_v49 = vpop.f32.mrb[47].mxu1  ;;  %v2520_v12 = vadd.f32 %v2519_v45, %v2518_v37 }
 0x15c   : > { %v2432_v55 = vadd.f32 %v2431_v49, %v2430_v41  ;;  %v1669_v41 = vadd.s32 24, %v4095_v31  ;;  %v1677_v49 = vadd.s32 88, %v4095_v31 }
 0x15d   : > { %v2521_v62 = vpop.f32.mrb[48].mxu0 }
 0x15e   : > { %v4055_v1 = vadd.f32 %v3017_v14, %v2432_v55  ;;  %v2667_v34 = vpop.f32.mrb[0].mxu1  ;;  %v2522_v25 = vpop.f32.mrb[49].mxu0  ;;  %v1671_v55 = vadd.s32 40, %v4095_v31 }
 0x15f   : > { %v2955_v61 = vadd.f32 %v3988_v30, %v2667_v34  ;;  %v1131_v28 = vpop.f32.mrb[1].mxu1  ;;  %v2523_v7 = vadd.f32 %v2522_v25, %v2521_v62  ;;  %v1749_v34 = vand.u32 15, %v1675_v33  ;;  %v1686_v25 = vand.u32 15, %v4095_v31 }
 0x160   : > { %v2960_v58 = vadd.f32 %v3983_v42, %v1131_v28 }
 0x161   : > { %v2524_v18 = vpop.f32.mrb[50].mxu0  ;;  %v4059_v8 = vadd.f32 %v2955_v61, %v2502_v29  ;;  %v4062_v35 = vadd.f32 %v4025_v47, %v2523_v7  ;;  %v1707_v7 = vand.u32 15, %v1669_v41  ;;  %vm4122_vm3 = vcmp.le.s32.totalorder %v1749_v34, 8 }
 0x162   : > { %v2670_v39 = vpop.f32.mrb[2].mxu1  ;;  %v2525_v57 = vpop.f32.mrb[51].mxu0  ;;  %v4065_v27 = vadd.f32 %v2960_v58, %v4021_v54  ;;  %v1670_v58 = vadd.s32 32, %v4095_v31  ;;  %vm4126_vm4 = vcmp.ge.s32.totalorder %v1686_v25, 1 }
 0x163   : > { %v2965_v15 = vadd.f32 %v3998_v60, %v2670_v39  ;;  %v1141_v20 = vpop.f32.mrb[3].mxu1  ;;  %v2526_v48 = vadd.f32 %v2525_v57, %v2524_v18  ;;  %v1763_v57 = vand.u32 15, %v1677_v49  ;;  %vm4134_vm6 = vcmp.le.s32.totalorder %v1707_v7, 8 }
 0x164   : > { %v2970_v30 = vadd.f32 %v3993_v9, %v1141_v20 }
 0x165   : > { %v2527_v52 = vpop.f32.mrb[52].mxu0  ;;  %v4070_v42 = vadd.f32 %v4029_v5, %v2526_v48  ;;  %v4072_v29 = vadd.f32 %v2965_v15, %v2508_v6  ;;  %vm4142_vm7 = vcmp.le.s32.totalorder %v1763_v57, 8 }
 0x166   : > { %v2673_v38 = vpop.f32.mrb[4].mxu1  ;;  %v2528_v47 = vpop.f32.mrb[53].mxu0  ;;  %v4075_v10 = vadd.f32 %v2970_v30, %v4031_v53  ;;  %v1721_v30 = vand.u32 15, %v1671_v55 }
 0x167   : > { %v2975_v54 = vadd.f32 %v4008_v23, %v2673_v38  ;;  %v1151_v44 = vpop.f32.mrb[5].mxu1  ;;  %v2529_v0 = vadd.f32 %v2528_v47, %v2527_v52  ;;  %v1678_v52 = vadd.s32 96, %v4095_v31 }
 0x168   : > { %v2980_v60 = vadd.f32 %v4003_v43, %v1151_v44  ;;  %vm4156_vm10 = vcmp.le.s32.totalorder %v1721_v30, 8 }
 0x169   : > { %v2530_v24 = vpop.f32.mrb[54].mxu0  ;;  %v4080_v9 = vadd.f32 %v4035_v26, %v2529_v0  ;;  %v4082_v50 = vadd.f32 %v2975_v54, %v2514_v59 }
 0x16a   : > { %v2676_v5 = vpop.f32.mrb[6].mxu1  ;;  %v2531_v6 = vpop.f32.mrb[55].mxu0  ;;  %v4084_v13 = vadd.f32 %v2980_v60, %v2511_v11 }
 0x16b   : > { %v2985_v46 = vadd.f32 %v4019_v36, %v2676_v5  ;;  %v1161_v53 = vpop.f32.mrb[7].mxu1  ;;  %v2532_v56 = vadd.f32 %v2531_v6, %v2530_v24  ;;  %v1714_v24 = vand.u32 15, %v1670_v58 }
 0x16c   : > { %v2990_v23 = vadd.f32 %v4013_v22, %v1161_v53  ;;  %v1667_v22 = vadd.s32 8, %v4095_v31 }
 0x16d   : > { %v2533_v19 = vpop.f32.mrb[56].mxu0  ;;  %v4089_v43 = vadd.f32 %v4039_v16, %v2532_v56  ;;  %v4091_v21 = vadd.f32 %v2985_v46, %v2520_v12  ;;  %v1674_v16 = vadd.s32 64, %v4095_v31  ;;  %v1676_v12 = vadd.s32 80, %v4095_v31 }
 0x16e   : > { %v2534_v26 = vpop.f32.mrb[57].mxu0  ;;  %v4093_v59 = vadd.f32 %v2990_v23, %v2517_v63  ;;  %v1693_v62 = vand.u32 15, %v1667_v22  ;;  %vm4174_vm12 = vcmp.ge.s32.totalorder %v1714_v24, 1 }
 0x16f   : > { %v2535_v2 = vadd.f32 %v2534_v26, %v2533_v19  ;;  %v1742_v61 = vand.u32 15, %v1674_v16  ;;  %v1756_v20 = vand.u32 15, %v1676_v12  ;;  %v1672_v12 = vadd.s32 48, %v4095_v31 }
 0x170   : > { %vm4118_vm2 = vcmp.le.s32.totalorder %v1693_v62, 8 }
 0x171   : > { %v2536_v11 = vpop.f32.mrb[58].mxu0  ;;  %v4098_v36 = vadd.f32 %v4043_v51, %v2535_v2  ;;  %v1668_v51 = vadd.s32 16, %v4095_v31  ;;  %vm4130_vm5 = vcmp.ge.s32.totalorder %v1742_v61, 1  ;;  %vm4150_vm9 = vcmp.ge.s32.totalorder %v1756_v20, 1 }
 0x172   : > { %v2537_v32 = vpop.f32.mrb[59].mxu0  ;;  %v1770_v2 = vand.u32 15, %v1678_v52  ;;  %v1728_v0 = vand.u32 15, %v1672_v12 }
 0x173   : > { %v2538_v3 = vadd.f32 %v2537_v32, %v2536_v11  ;;  %v1700_v15 = vand.u32 15, %v1668_v51 }
 0x174   : > { %vm4194_vm13 = vcmp.ge.s32.totalorder %v1770_v2, 1  ;;  %vm1880_vm0 = vcmp.ge.s32.totalorder %v1728_v0, 1 }
 0x175   : > { %v2539_v37 = vpop.f32.mrb[60].mxu0  ;;  %v4105_v63 = vadd.f32 %v4047_v17, %v2538_v3  ;;  %v1679_v17 = vadd.s32 104, %v4095_v31  ;;  %vm4146_vm8 = vcmp.ge.s32.totalorder %v1700_v15, 1 }
 0x176   : > { %v2540_v45 = vpop.f32.mrb[61].mxu0 }
 0x177   : > { %v2541_v14 = vadd.f32 %v2540_v45, %v2539_v37  ;;  %v1777_v60 = vand.u32 15, %v1679_v17 }
 0x179   : > { %v2542_v28 = vpop.f32.mrb[62].mxu0  ;;  %v4115_v18 = vadd.f32 %v4051_v40, %v2541_v14  ;;  %vm4170_vm11 = vcmp.le.s32.totalorder %v1777_v60, 8 }
 0x17a   : > { %v2543_v39 = vpop.f32.mrb[63].mxu0 }
 0x17b   : > { %v2544_v48 = vadd.f32 %v2543_v39, %v2542_v28  ;;  %v1680_v39 = vadd.s32 112, %v4095_v31 }
 0x17d   : > { %v2723_v44 = vpop.f32.mrb[64].mxu0  ;;  %v4139_v5 = vadd.f32 %v4055_v1, %v2544_v48 }
 0x17e   : > { %v2957_v6 = vadd.f32 %v4059_v8, %v2723_v44  ;;  %v2735_v46 = vpop.f32.mrb[8].mxu1  ;;  %v1554_v53 = vpop.f32.mrb[65].mxu0 }
 0x17f   : > { %v2996_v19 = vadd.f32 %v4070_v42, %v2735_v46  ;;  %v2962_v1 = vadd.f32 %v4065_v27, %v1554_v53  ;;  %v1594_v26 = vpop.f32.mrb[9].mxu1  ;;  %v1673_v42 = vadd.s32 56, %v4095_v31  ;;  %v1681_v27 = vadd.s32 120, %v4095_v31 }
 0x180   : > { %v1650_v11 = vmax.f32 %v2957_v6, 0.0  ;;  %v3000_v32 = vadd.f32 %v4062_v35, %v1594_v26 }
 0x181   : > { %v1658_v3 = vmax.f32 %v2996_v19, 0.0  ;;  %v1649_v22 = vmax.f32 %v2962_v1, 0.0  ;;  %v2726_v33 = vpop.f32.mrb[66].mxu0  ;;  %v1791_v30 = vand.u32 15, %v1681_v27 }
 0x182   : > { %v1955_v35 = vsel %vm4118_vm2, %v1650_v11, 0.0  ;;  %v1657_v41 = vmax.f32 %v3000_v32, 0.0  ;;  %v2967_v45 = vadd.f32 %v4072_v29, %v2726_v33  ;;  %v2738_v49 = vpop.f32.mrb[10].mxu1  ;;  %v1564_v51 = vpop.f32.mrb[67].mxu0 }
 0x183   : > { %1971 = vst [vmem:[%s4165_s7 + $0x8] sm:$0xff] %v1955_v35  ;;  %v1963_v14 = vsel %vm4122_vm3, %v1658_v3, 0.0  ;;  %v1954_v55 = vsel %vm4126_vm4, %v1649_v22, 0.0  ;;  %v3004_v62 = vadd.f32 %v4089_v43, %v2738_v49  ;;  %v2972_v34 = vadd.f32 %v4075_v10, %v1564_v51  ;;  %v1604_v25 = vpop.f32.mrb[11].mxu1 }
 0x184   : > { %1979 = vst [vmem:[%s4165_s7 + $0x48] sm:$0xff] %v1963_v14  ;;  %1970 = vst [vmem:[%s4165_s7] sm:$0xff] %v1954_v55  ;;  %v1962_v29 = vsel %vm4130_vm5, %v1657_v41, 0.0  ;;  %v1652_v61 = vmax.f32 %v2967_v45, 0.0  ;;  %v3008_v28 = vadd.f32 %v4080_v9, %v1604_v25  ;;  %v1735_v10 = vand.u32 15, %v1673_v42 }
 0x185   : > { %1978 = vst [vmem:[%s4165_s7 + $0x40] sm:$0xff] %v1962_v29  ;;  %v1660_v17 = vmax.f32 %v3004_v62, 0.0  ;;  %v1651_v58 = vmax.f32 %v2972_v34, 0.0  ;;  %v2729_v43 = vpop.f32.mrb[68].mxu0  ;;  %vm4223_vm15 = vcmp.le.s32.totalorder %v1791_v30, 8 }
 0x186   : > { %v1957_v57 = vsel %vm4134_vm6, %v1652_v61, 0.0  ;;  %v1659_v15 = vmax.f32 %v3008_v28, 0.0  ;;  %v2977_v20 = vadd.f32 %v4082_v50, %v2729_v43  ;;  %v2741_v9 = vpop.f32.mrb[12].mxu1  ;;  %v1574_v48 = vpop.f32.mrb[69].mxu0  ;;  %vm4216_vm14 = vcmp.le.s32.totalorder %v1735_v10, 8 }
 0x187   : > { %1973 = vst [vmem:[%s4165_s7 + $0x18] sm:$0xff] %v1957_v57  ;;  %v1965_v52 = vsel %vm4142_vm7, %v1660_v17, 0.0  ;;  %v1956_v38 = vsel %vm4146_vm8, %v1651_v58, 0.0  ;;  %v3012_v47 = vadd.f32 %v4105_v63, %v2741_v9  ;;  %v2982_v31 = vadd.f32 %v4084_v13, %v1574_v48  ;;  %v1614_v54 = vpop.f32.mrb[13].mxu1 }
 0x188   : > { %1981 = vst [vmem:[%s4165_s7 + $0x58] sm:$0xff] %v1965_v52  ;;  %1972 = vst [vmem:[%s4165_s7 + $0x10] sm:$0xff] %v1956_v38  ;;  %v1964_v50 = vsel %vm4150_vm9, %v1659_v15, 0.0  ;;  %v1654_v40 = vmax.f32 %v2977_v20, 0.0  ;;  %v3016_v44 = vadd.f32 %v4098_v36, %v1614_v54  ;;  %v1784_v13 = vand.u32 15, %v1680_v39 }
 0x189   : > { %1980 = vst [vmem:[%s4165_s7 + $0x50] sm:$0xff] %v1964_v50  ;;  %v1662_v60 = vmax.f32 %v3012_v47, 0.0  ;;  %v1653_v24 = vmax.f32 %v2982_v31, 0.0  ;;  %v2732_v6 = vpop.f32.mrb[70].mxu0 }
 0x18a   : > { %v1959_v46 = vsel %vm4156_vm10, %v1654_v40, 0.0  ;;  %v1661_v53 = vmax.f32 %v3016_v44, 0.0  ;;  %v2987_v56 = vadd.f32 %v4091_v21, %v2732_v6  ;;  %v2744_v36 = vpop.f32.mrb[14].mxu1  ;;  %v1584_v4 = vpop.f32.mrb[71].mxu0  ;;  %vm1888_vm1 = vcmp.ge.s32.totalorder %v1784_v13, 1 }
 0x18b   : > { %1975 = vst [vmem:[%s4165_s7 + $0x28] sm:$0xff] %v1959_v46  ;;  %v1967_v19 = vsel %vm4170_vm11, %v1662_v60, 0.0  ;;  %v1958_v1 = vsel %vm4174_vm12, %v1653_v24, 0.0  ;;  %v3020_v26 = vadd.f32 %v4139_v5, %v2744_v36  ;;  %v2992_v8 = vadd.f32 %v4093_v59, %v1584_v4  ;;  %v1624_v21 = vpop.f32.mrb[15].mxu1 }
 0x18c   : > { %1983 = vst [vmem:[%s4165_s7 + $0x68] sm:$0xff] %v1967_v19  ;;  %1974 = vst [vmem:[%s4165_s7 + $0x20] sm:$0xff] %v1958_v1  ;;  %v1966_v2 = vsel %vm4194_vm13, %v1661_v53, 0.0  ;;  %v1656_v11 = vmax.f32 %v2987_v56, 0.0  ;;  %v3024_v32 = vadd.f32 %v4115_v18, %v1624_v21 }
 0x18d   : > { %1982 = vst [vmem:[%s4165_s7 + $0x60] sm:$0xff] %v1966_v2  ;;  %v1664_v42 = vmax.f32 %v3020_v26, 0.0  ;;  %v1655_v27 = vmax.f32 %v2992_v8, 0.0 }
 0x18e   : > { %v1961_v59 = vsel %vm4216_vm14, %v1656_v11, 0.0  ;;  %v1663_v5 = vmax.f32 %v3024_v32, 0.0 }
 0x18f   : > { %1977 = vst [vmem:[%s4165_s7 + $0x38] sm:$0xff] %v1961_v59  ;;  %v1969_v3 = vsel %vm4223_vm15, %v1664_v42, 0.0  ;;  %v1960_v22 = vsel %vm1880_vm0, %v1655_v27, 0.0 }
 0x190   : > { %1985 = vst [vmem:[%s4165_s7 + $0x78] sm:$0xff] %v1969_v3  ;;  %1976 = vst [vmem:[%s4165_s7 + $0x30] sm:$0xff] %v1960_v22  ;;  %v1968_v33 = vsel %vm1888_vm1, %v1663_v5, 0.0 }
 0x191   : > { %1984 = vst [vmem:[%s4165_s7 + $0x70] sm:$0xff] %v1968_v33 }
 0x192 PF: > { %s15_s0 = sadd.s32 1, %s3096_s0   ;;  %s4291_s18 = smov %s3092_s19 }
 0x193   : > { %p12_p5 = scmp.ge.s32.totalorder %s15_s0, 4   ;;  %s4292_s19 = smov %s4294_s2 }
 0x195   :  { %14 = sbr.rel (!%p12_p5) target bundleno = 2 (0x2), region = 78 }

</bundles_post_ra>
